<compile_context>
chip_gen: v7x
topology: tpu7x:2x2x1
jax: 0.10.0
libtpu: 0.0.40
codegen_flags: <defaults>
</compile_context>

<pallas_src>
import functools

import jax
import jax.numpy as jnp
from jax.experimental import pallas as pl
from jax.experimental.pallas import tpu as pltpu


_MAX_BLOCK_ELEMS = 1 << 20   # ~4 MiB of f32 per output block (x2 when double-buffered)
_LANE_CHUNK = 512            # lane-chunk width for building the skewed window


def _pick_tiles(seq_len: int, num_heads: int, itemsize: int):
    """Pick (heads-per-block, row-tile, col-tile, slab) sizes."""
    # Lane (last) dim: full seq_len when it fits, else a lane-dense multiple of 128.
    tn = seq_len if seq_len <= 2048 else 2048
    # Sublane (second-minor) dim: multiple of the dtype's sublane tile, or == seq_len.
    row_align = 8 * max(1, 4 // itemsize)            # 8 for f32, 16 for bf16
    if seq_len < row_align:
        tm = seq_len
    else:
        cap = max(row_align, (_MAX_BLOCK_ELEMS // tn) // row_align * row_align)
        tm = min((seq_len // row_align) * row_align, cap, 1024)
    # Slab height for the Toeplitz skew (f32 vreg sublane count).
    sb = 8 if (tm >= 8 and tm % 8 == 0) else tm
    # Heads per block: largest divisor of H keeping the block <= ~4 MiB, while
    # leaving >= 2 grid steps so megacore / multi-TC chips can split the work.
    n_row = (seq_len + tm - 1) // tm
    n_col = (seq_len + tn - 1) // tn
    divisors = [d for d in range(1, num_heads + 1) if num_heads % d == 0]
    hb = 1
    for d in divisors:
        if d * tm * tn <= _MAX_BLOCK_ELEMS:
            hb = d
    while hb > 1 and (num_heads // hb) * n_row * n_col < 2:
        hb = max(d for d in divisors if d < hb)
    return hb, tm, tn, sb


def _tisa_kernel(off_ref, amp_ref, nsharp_ref, out_ref, acc_ref, *,
                 hb, tm, tn, sb, nk):
    """One (head-block, row-tile, col-tile) grid step.

    off_ref / amp_ref / nsharp_ref : (K, H) f32 in SMEM (nsharp = -|sharpness|)
    out_ref                        : (hb, tm, tn) output block in VMEM
    acc_ref                        : (sb, tm + tn - sb) f32 VMEM scratch
    """
    gh = pl.program_id(0)                 # head-block index
    i_base = pl.program_id(1) * tm
    j_base = pl.program_id(2) * tn

    w = tm + tn - sb                      # skewed-window width (static)
    # acc[b, m] = f_h(c0 + b - m) with c0 = i_base - j_base - 1 + (tm - sb), so
    #   out[sb*a + b, j] = f_h((i_base + sb*a + b) - (j_base + j) - 1)
    #                    = acc[b, j + (tm - sb - sb*a)].
    c0 = i_base - j_base - 1 + (tm - sb)

    n_chunks = (w + _LANE_CHUNK - 1) // _LANE_CHUNK   # static python int

    for h_loc in range(hb):                           # static unroll (hb <= H)
        h = gh * hb + h_loc                           # global head (traced scalar)
        offs = [off_ref[k, h] for k in range(nk)]     # SMEM scalar reads,
        amps = [amp_ref[k, h] for k in range(nk)]     # broadcast by the VPU
        nsps = [nsharp_ref[k, h] for k in range(nk)]  # == -|sharpness[k, h]|

        # (1) Build the skewed RBF window into VMEM scratch, in lane-chunks so
        #     vreg live ranges stay small (no spill traffic on the vst path).
        for c in range(n_chunks):
            start = c * _LANE_CHUNK
            cw = min(_LANE_CHUNK, w - start)
            # int32 iota cast to f32: exact for |i - j| < 2^24 (any real seq_len).
            rel = (
                (c0 - start)
                + jax.lax.broadcasted_iota(jnp.int32, (sb, cw), 0)
                - jax.lax.broadcasted_iota(jnp.int32, (sb, cw), 1)
            ).astype(jnp.float32)
            vals = jnp.zeros((sb, cw), jnp.float32)
            for k in range(nk):                       # nk tiny & static -> unrolled
                d = offs[k] - rel
                vals = vals + amps[k] * jnp.exp(nsps[k] * (d * d))
            acc_ref[:, start:start + cw] = vals

        # (2) Expand the window into the (tm, tn) tile: one sb-row slab per
        #     step; shifted lane reads from scratch (vld slots are plentiful),
        #     aligned lane-dense stores into the output block.
        for a in range(tm // sb):
            s = tm - sb - sb * a
            out_ref[h_loc, sb * a:sb * (a + 1), :] = (
                acc_ref[:, s:s + tn].astype(out_ref.dtype))


def tisa_forward(kernel_offsets, kernel_amplitudes, kernel_sharpness, seq_len: int,
                 out_dtype=jnp.float32):
    """Pallas implementation of Tisa.forward(seq_len) -> (H, seq_len, seq_len)."""
    num_kernels, num_heads = kernel_offsets.shape
    seq_len = int(seq_len)
    if num_kernels == 0 or seq_len == 0:
        return jnp.zeros((num_heads, seq_len, seq_len), out_dtype)

    itemsize = jnp.dtype(out_dtype).itemsize
    hb, tm, tn, sb = _pick_tiles(seq_len, num_heads, itemsize)
    grid = (num_heads // hb, pl.cdiv(seq_len, tm), pl.cdiv(seq_len, tn))

    off = kernel_offsets.astype(jnp.float32)
    amp = kernel_amplitudes.astype(jnp.float32)
    neg_abs_sharp = -jnp.abs(kernel_sharpness.astype(jnp.float32))  # hoisted abs

    kern = functools.partial(_tisa_kernel, hb=hb, tm=tm, tn=tn, sb=sb,
                             nk=num_kernels)
    smem_spec = pl.BlockSpec(memory_space=pltpu.MemorySpace.SMEM)

    return pl.pallas_call(
        kern,
        out_shape=jax.ShapeDtypeStruct((num_heads, seq_len, seq_len), out_dtype),
        grid=grid,
        in_specs=[smem_spec, smem_spec, smem_spec],
        out_specs=pl.BlockSpec((hb, tm, tn), lambda g, i, j: (g, i, j)),
        scratch_shapes=[pltpu.VMEM((sb, tm + tn - sb), jnp.float32)],
        compiler_params=pltpu.CompilerParams(
            dimension_semantics=("parallel", "parallel", "parallel"),
            vmem_limit_bytes=32 * 1024 * 1024,
        ),
    )(off, amp, neg_abs_sharp)


def tisa_reference(kernel_offsets, kernel_amplitudes, kernel_sharpness, seq_len: int):
    """Pure-JAX transcription of the PyTorch forward (including the gather)."""
    S = seq_len
    rel = jnp.arange(-S, S + 1).astype(jnp.float32)                       # (2S+1,)
    d = kernel_offsets[:, :, None] - rel[None, None, :]                   # (K, H, 2S+1)
    scores = jnp.sum(
        kernel_amplitudes[:, :, None]
        * jnp.exp(-jnp.abs(kernel_sharpness)[:, :, None] * d * d),
        axis=0,
    )                                                                     # (H, 2S+1)
    idx = (
        (jnp.arange(0, -S * S, -1) + (S - 1)).reshape(S, S)
        + (S + 1) * jnp.arange(S).reshape(-1, 1)
    ).reshape(-1)
    return jnp.take(scores, idx, axis=1).reshape(scores.shape[0], S, S)


if __name__ == "__main__":
    num_attention_heads = 12
    num_kernels = 5

    key = jax.random.PRNGKey(0)
    k_off, k_amp, k_shp = jax.random.split(key, 3)

    # Deterministic init mirroring _init_weights():
    #   offsets ~ N(0, 5), amplitudes ~ N(0.1, 0.01), sharpness ~ N(0.1, 0.01)
    kernel_offsets = 5.0 * jax.random.normal(
        k_off, (num_kernels, num_attention_heads), jnp.float32
    )
    kernel_amplitudes = 0.1 + 0.01 * jax.random.normal(
        k_amp, (num_kernels, num_attention_heads), jnp.float32
    )
    kernel_sharpness = 0.1 + 0.01 * jax.random.normal(
        k_shp, (num_kernels, num_attention_heads), jnp.float32
    )

    # seq_len=8: single-slab path; seq_len=64: multi-slab skew + multi-head block;
    # seq_len=300: ragged row tiles (partial-block writeback) + multi-head block.
    for seq_len in (8, 64, 300):
        out = tisa_forward(kernel_offsets, kernel_amplitudes, kernel_sharpness, seq_len)
        out = jax.block_until_ready(out)
        ref = tisa_reference(kernel_offsets, kernel_amplitudes, kernel_sharpness, seq_len)
        assert out.shape == (num_attention_heads, seq_len, seq_len)
        assert jnp.allclose(out, ref, atol=1e-5, rtol=1e-5), f"mismatch at seq_len={seq_len}"

    print("KERNEL_OK")
</pallas_src>

<mosaic_0001>
module attributes {stable_mosaic.version = 11 : i64} {
  func.func @_tisa_kernel(%arg0: i32, %arg1: i32, %arg2: i32, %arg3: memref<5x12xf32, #tpu.memory_space<smem>>, %arg4: memref<5x12xf32, #tpu.memory_space<smem>>, %arg5: memref<5x12xf32, #tpu.memory_space<smem>>, %arg6: memref<6x8x8xf32, #tpu.memory_space<vmem>>, %arg7: memref<8x8xf32, #tpu.memory_space<vmem>>) attributes {dimension_semantics = [#tpu.dimension_semantics<parallel>, #tpu.dimension_semantics<parallel>, #tpu.dimension_semantics<parallel>], iteration_bounds = array<i64: 2, 1, 1>, scalar_prefetch = 0 : i64, scratch_operands = 1 : i64, tpu.core_type = #tpu.core_type<tc>, window_params = [{transform_indices = @transform_0, window_bounds = array<i64: 5, 12>}, {transform_indices = @transform_1, window_bounds = array<i64: 5, 12>}, {transform_indices = @transform_2, window_bounds = array<i64: 5, 12>}, {transform_indices = @transform_3, window_bounds = array<i64: 6, 8, 8>}]} {
    %c8_i32 = arith.constant 8 : i32
    %0 = arith.muli %arg1, %c8_i32 : i32
    %c8_i32_0 = arith.constant 8 : i32
    %1 = arith.muli %arg2, %c8_i32_0 : i32
    %2 = arith.subi %0, %1 : i32
    %c1_i32 = arith.constant 1 : i32
    %3 = arith.subi %2, %c1_i32 : i32
    %c0_i32 = arith.constant 0 : i32
    %4 = arith.addi %3, %c0_i32 : i32
    %c6_i32 = arith.constant 6 : i32
    %5 = arith.muli %arg0, %c6_i32 : i32
    %c0_i32_1 = arith.constant 0 : i32
    %6 = arith.addi %5, %c0_i32_1 : i32
    %c0 = arith.constant 0 : index
    %7 = arith.index_cast %6 : i32 to index
    %8 = memref.load %arg3[%c0, %7] : memref<5x12xf32, #tpu.memory_space<smem>>
    %c1 = arith.constant 1 : index
    %9 = arith.index_cast %6 : i32 to index
    %10 = memref.load %arg3[%c1, %9] : memref<5x12xf32, #tpu.memory_space<smem>>
    %c2 = arith.constant 2 : index
    %11 = arith.index_cast %6 : i32 to index
    %12 = memref.load %arg3[%c2, %11] : memref<5x12xf32, #tpu.memory_space<smem>>
    %c3 = arith.constant 3 : index
    %13 = arith.index_cast %6 : i32 to index
    %14 = memref.load %arg3[%c3, %13] : memref<5x12xf32, #tpu.memory_space<smem>>
    %c4 = arith.constant 4 : index
    %15 = arith.index_cast %6 : i32 to index
    %16 = memref.load %arg3[%c4, %15] : memref<5x12xf32, #tpu.memory_space<smem>>
    %c0_2 = arith.constant 0 : index
    %17 = arith.index_cast %6 : i32 to index
    %18 = memref.load %arg4[%c0_2, %17] : memref<5x12xf32, #tpu.memory_space<smem>>
    %c1_3 = arith.constant 1 : index
    %19 = arith.index_cast %6 : i32 to index
    %20 = memref.load %arg4[%c1_3, %19] : memref<5x12xf32, #tpu.memory_space<smem>>
    %c2_4 = arith.constant 2 : index
    %21 = arith.index_cast %6 : i32 to index
    %22 = memref.load %arg4[%c2_4, %21] : memref<5x12xf32, #tpu.memory_space<smem>>
    %c3_5 = arith.constant 3 : index
    %23 = arith.index_cast %6 : i32 to index
    %24 = memref.load %arg4[%c3_5, %23] : memref<5x12xf32, #tpu.memory_space<smem>>
    %c4_6 = arith.constant 4 : index
    %25 = arith.index_cast %6 : i32 to index
    %26 = memref.load %arg4[%c4_6, %25] : memref<5x12xf32, #tpu.memory_space<smem>>
    %c0_7 = arith.constant 0 : index
    %27 = arith.index_cast %6 : i32 to index
    %28 = memref.load %arg5[%c0_7, %27] : memref<5x12xf32, #tpu.memory_space<smem>>
    %c1_8 = arith.constant 1 : index
    %29 = arith.index_cast %6 : i32 to index
    %30 = memref.load %arg5[%c1_8, %29] : memref<5x12xf32, #tpu.memory_space<smem>>
    %c2_9 = arith.constant 2 : index
    %31 = arith.index_cast %6 : i32 to index
    %32 = memref.load %arg5[%c2_9, %31] : memref<5x12xf32, #tpu.memory_space<smem>>
    %c3_10 = arith.constant 3 : index
    %33 = arith.index_cast %6 : i32 to index
    %34 = memref.load %arg5[%c3_10, %33] : memref<5x12xf32, #tpu.memory_space<smem>>
    %c4_11 = arith.constant 4 : index
    %35 = arith.index_cast %6 : i32 to index
    %36 = memref.load %arg5[%c4_11, %35] : memref<5x12xf32, #tpu.memory_space<smem>>
    %c0_i32_12 = arith.constant 0 : i32
    %37 = arith.subi %4, %c0_i32_12 : i32
    %38 = tpu.iota {dimensions = array<i32: 0>} : vector<8x8xi32>
    %39 = vector.broadcast %37 : i32 to vector<8x8xi32>
    %40 = arith.addi %39, %38 : vector<8x8xi32>
    %41 = tpu.iota {dimensions = array<i32: 1>} : vector<8x8xi32>
    %42 = arith.subi %40, %41 : vector<8x8xi32>
    %43 = arith.sitofp %42 : vector<8x8xi32> to vector<8x8xf32>
    %cst = arith.constant 0.000000e+00 : f32
    %44 = vector.broadcast %cst : f32 to vector<8x8xf32>
    %45 = vector.broadcast %8 : f32 to vector<8x8xf32>
    %46 = arith.subf %45, %43 : vector<8x8xf32>
    %47 = arith.mulf %46, %46 : vector<8x8xf32>
    %48 = vector.broadcast %28 : f32 to vector<8x8xf32>
    %49 = arith.mulf %48, %47 : vector<8x8xf32>
    %50 = math.exp %49 : vector<8x8xf32>
    %51 = vector.broadcast %18 : f32 to vector<8x8xf32>
    %52 = arith.mulf %51, %50 : vector<8x8xf32>
    %53 = arith.addf %44, %52 : vector<8x8xf32>
    %54 = vector.broadcast %10 : f32 to vector<8x8xf32>
    %55 = arith.subf %54, %43 : vector<8x8xf32>
    %56 = arith.mulf %55, %55 : vector<8x8xf32>
    %57 = vector.broadcast %30 : f32 to vector<8x8xf32>
    %58 = arith.mulf %57, %56 : vector<8x8xf32>
    %59 = math.exp %58 : vector<8x8xf32>
    %60 = vector.broadcast %20 : f32 to vector<8x8xf32>
    %61 = arith.mulf %60, %59 : vector<8x8xf32>
    %62 = arith.addf %53, %61 : vector<8x8xf32>
    %63 = vector.broadcast %12 : f32 to vector<8x8xf32>
    %64 = arith.subf %63, %43 : vector<8x8xf32>
    %65 = arith.mulf %64, %64 : vector<8x8xf32>
    %66 = vector.broadcast %32 : f32 to vector<8x8xf32>
    %67 = arith.mulf %66, %65 : vector<8x8xf32>
    %68 = math.exp %67 : vector<8x8xf32>
    %69 = vector.broadcast %22 : f32 to vector<8x8xf32>
    %70 = arith.mulf %69, %68 : vector<8x8xf32>
    %71 = arith.addf %62, %70 : vector<8x8xf32>
    %72 = vector.broadcast %14 : f32 to vector<8x8xf32>
    %73 = arith.subf %72, %43 : vector<8x8xf32>
    %74 = arith.mulf %73, %73 : vector<8x8xf32>
    %75 = vector.broadcast %34 : f32 to vector<8x8xf32>
    %76 = arith.mulf %75, %74 : vector<8x8xf32>
    %77 = math.exp %76 : vector<8x8xf32>
    %78 = vector.broadcast %24 : f32 to vector<8x8xf32>
    %79 = arith.mulf %78, %77 : vector<8x8xf32>
    %80 = arith.addf %71, %79 : vector<8x8xf32>
    %81 = vector.broadcast %16 : f32 to vector<8x8xf32>
    %82 = arith.subf %81, %43 : vector<8x8xf32>
    %83 = arith.mulf %82, %82 : vector<8x8xf32>
    %84 = vector.broadcast %36 : f32 to vector<8x8xf32>
    %85 = arith.mulf %84, %83 : vector<8x8xf32>
    %86 = math.exp %85 : vector<8x8xf32>
    %87 = vector.broadcast %26 : f32 to vector<8x8xf32>
    %88 = arith.mulf %87, %86 : vector<8x8xf32>
    %89 = arith.addf %80, %88 : vector<8x8xf32>
    %c0_13 = arith.constant 0 : index
    %c0_14 = arith.constant 0 : index
    %90 = vector.load %arg7[%c0_13, %c0_14] : memref<8x8xf32, #tpu.memory_space<vmem>>, vector<8x8xf32>
    tpu.vector_store %arg7[%c0_13, %c0_14], %89 {strides = array<i32>} : memref<8x8xf32, #tpu.memory_space<vmem>>, vector<8x8xf32>,
    %c0_15 = arith.constant 0 : index
    %c0_16 = arith.constant 0 : index
    %91 = vector.load %arg7[%c0_15, %c0_16] : memref<8x8xf32, #tpu.memory_space<vmem>>, vector<8x8xf32>
    %c0_17 = arith.constant 0 : index
    %c0_18 = arith.constant 0 : index
    %c0_19 = arith.constant 0 : index
    %92 = vector.load %arg6[%c0_17, %c0_18, %c0_19] : memref<6x8x8xf32, #tpu.memory_space<vmem>>, vector<1x8x8xf32>
    %93 = vector.shape_cast %92 : vector<1x8x8xf32> to vector<8x8xf32>
    %94 = vector.shape_cast %91 : vector<8x8xf32> to vector<1x8x8xf32>
    tpu.vector_store %arg6[%c0_17, %c0_18, %c0_19], %94 {strides = array<i32>} : memref<6x8x8xf32, #tpu.memory_space<vmem>>, vector<1x8x8xf32>,
    %c6_i32_20 = arith.constant 6 : i32
    %95 = arith.muli %arg0, %c6_i32_20 : i32
    %c1_i32_21 = arith.constant 1 : i32
    %96 = arith.addi %95, %c1_i32_21 : i32
    %c0_22 = arith.constant 0 : index
    %97 = arith.index_cast %96 : i32 to index
    %98 = memref.load %arg3[%c0_22, %97] : memref<5x12xf32, #tpu.memory_space<smem>>
    %c1_23 = arith.constant 1 : index
    %99 = arith.index_cast %96 : i32 to index
    %100 = memref.load %arg3[%c1_23, %99] : memref<5x12xf32, #tpu.memory_space<smem>>
    %c2_24 = arith.constant 2 : index
    %101 = arith.index_cast %96 : i32 to index
    %102 = memref.load %arg3[%c2_24, %101] : memref<5x12xf32, #tpu.memory_space<smem>>
    %c3_25 = arith.constant 3 : index
    %103 = arith.index_cast %96 : i32 to index
    %104 = memref.load %arg3[%c3_25, %103] : memref<5x12xf32, #tpu.memory_space<smem>>
    %c4_26 = arith.constant 4 : index
    %105 = arith.index_cast %96 : i32 to index
    %106 = memref.load %arg3[%c4_26, %105] : memref<5x12xf32, #tpu.memory_space<smem>>
    %c0_27 = arith.constant 0 : index
    %107 = arith.index_cast %96 : i32 to index
    %108 = memref.load %arg4[%c0_27, %107] : memref<5x12xf32, #tpu.memory_space<smem>>
    %c1_28 = arith.constant 1 : index
    %109 = arith.index_cast %96 : i32 to index
    %110 = memref.load %arg4[%c1_28, %109] : memref<5x12xf32, #tpu.memory_space<smem>>
    %c2_29 = arith.constant 2 : index
    %111 = arith.index_cast %96 : i32 to index
    %112 = memref.load %arg4[%c2_29, %111] : memref<5x12xf32, #tpu.memory_space<smem>>
    %c3_30 = arith.constant 3 : index
    %113 = arith.index_cast %96 : i32 to index
    %114 = memref.load %arg4[%c3_30, %113] : memref<5x12xf32, #tpu.memory_space<smem>>
    %c4_31 = arith.constant 4 : index
    %115 = arith.index_cast %96 : i32 to index
    %116 = memref.load %arg4[%c4_31, %115] : memref<5x12xf32, #tpu.memory_space<smem>>
    %c0_32 = arith.constant 0 : index
    %117 = arith.index_cast %96 : i32 to index
    %118 = memref.load %arg5[%c0_32, %117] : memref<5x12xf32, #tpu.memory_space<smem>>
    %c1_33 = arith.constant 1 : index
    %119 = arith.index_cast %96 : i32 to index
    %120 = memref.load %arg5[%c1_33, %119] : memref<5x12xf32, #tpu.memory_space<smem>>
    %c2_34 = arith.constant 2 : index
    %121 = arith.index_cast %96 : i32 to index
    %122 = memref.load %arg5[%c2_34, %121] : memref<5x12xf32, #tpu.memory_space<smem>>
    %c3_35 = arith.constant 3 : index
    %123 = arith.index_cast %96 : i32 to index
    %124 = memref.load %arg5[%c3_35, %123] : memref<5x12xf32, #tpu.memory_space<smem>>
    %c4_36 = arith.constant 4 : index
    %125 = arith.index_cast %96 : i32 to index
    %126 = memref.load %arg5[%c4_36, %125] : memref<5x12xf32, #tpu.memory_space<smem>>
    %c0_i32_37 = arith.constant 0 : i32
    %127 = arith.subi %4, %c0_i32_37 : i32
    %128 = tpu.iota {dimensions = array<i32: 0>} : vector<8x8xi32>
    %129 = vector.broadcast %127 : i32 to vector<8x8xi32>
    %130 = arith.addi %129, %128 : vector<8x8xi32>
    %131 = tpu.iota {dimensions = array<i32: 1>} : vector<8x8xi32>
    %132 = arith.subi %130, %131 : vector<8x8xi32>
    %133 = arith.sitofp %132 : vector<8x8xi32> to vector<8x8xf32>
    %cst_38 = arith.constant 0.000000e+00 : f32
    %134 = vector.broadcast %cst_38 : f32 to vector<8x8xf32>
    %135 = vector.broadcast %98 : f32 to vector<8x8xf32>
    %136 = arith.subf %135, %133 : vector<8x8xf32>
    %137 = arith.mulf %136, %136 : vector<8x8xf32>
    %138 = vector.broadcast %118 : f32 to vector<8x8xf32>
    %139 = arith.mulf %138, %137 : vector<8x8xf32>
    %140 = math.exp %139 : vector<8x8xf32>
    %141 = vector.broadcast %108 : f32 to vector<8x8xf32>
    %142 = arith.mulf %141, %140 : vector<8x8xf32>
    %143 = arith.addf %134, %142 : vector<8x8xf32>
    %144 = vector.broadcast %100 : f32 to vector<8x8xf32>
    %145 = arith.subf %144, %133 : vector<8x8xf32>
    %146 = arith.mulf %145, %145 : vector<8x8xf32>
    %147 = vector.broadcast %120 : f32 to vector<8x8xf32>
    %148 = arith.mulf %147, %146 : vector<8x8xf32>
    %149 = math.exp %148 : vector<8x8xf32>
    %150 = vector.broadcast %110 : f32 to vector<8x8xf32>
    %151 = arith.mulf %150, %149 : vector<8x8xf32>
    %152 = arith.addf %143, %151 : vector<8x8xf32>
    %153 = vector.broadcast %102 : f32 to vector<8x8xf32>
    %154 = arith.subf %153, %133 : vector<8x8xf32>
    %155 = arith.mulf %154, %154 : vector<8x8xf32>
    %156 = vector.broadcast %122 : f32 to vector<8x8xf32>
    %157 = arith.mulf %156, %155 : vector<8x8xf32>
    %158 = math.exp %157 : vector<8x8xf32>
    %159 = vector.broadcast %112 : f32 to vector<8x8xf32>
    %160 = arith.mulf %159, %158 : vector<8x8xf32>
    %161 = arith.addf %152, %160 : vector<8x8xf32>
    %162 = vector.broadcast %104 : f32 to vector<8x8xf32>
    %163 = arith.subf %162, %133 : vector<8x8xf32>
    %164 = arith.mulf %163, %163 : vector<8x8xf32>
    %165 = vector.broadcast %124 : f32 to vector<8x8xf32>
    %166 = arith.mulf %165, %164 : vector<8x8xf32>
    %167 = math.exp %166 : vector<8x8xf32>
    %168 = vector.broadcast %114 : f32 to vector<8x8xf32>
    %169 = arith.mulf %168, %167 : vector<8x8xf32>
    %170 = arith.addf %161, %169 : vector<8x8xf32>
    %171 = vector.broadcast %106 : f32 to vector<8x8xf32>
    %172 = arith.subf %171, %133 : vector<8x8xf32>
    %173 = arith.mulf %172, %172 : vector<8x8xf32>
    %174 = vector.broadcast %126 : f32 to vector<8x8xf32>
    %175 = arith.mulf %174, %173 : vector<8x8xf32>
    %176 = math.exp %175 : vector<8x8xf32>
    %177 = vector.broadcast %116 : f32 to vector<8x8xf32>
    %178 = arith.mulf %177, %176 : vector<8x8xf32>
    %179 = arith.addf %170, %178 : vector<8x8xf32>
    %c0_39 = arith.constant 0 : index
    %c0_40 = arith.constant 0 : index
    %180 = vector.load %arg7[%c0_39, %c0_40] : memref<8x8xf32, #tpu.memory_space<vmem>>, vector<8x8xf32>
    tpu.vector_store %arg7[%c0_39, %c0_40], %179 {strides = array<i32>} : memref<8x8xf32, #tpu.memory_space<vmem>>, vector<8x8xf32>,
    %c0_41 = arith.constant 0 : index
    %c0_42 = arith.constant 0 : index
    %181 = vector.load %arg7[%c0_41, %c0_42] : memref<8x8xf32, #tpu.memory_space<vmem>>, vector<8x8xf32>
    %c1_43 = arith.constant 1 : index
    %c0_44 = arith.constant 0 : index
    %c0_45 = arith.constant 0 : index
    %182 = vector.load %arg6[%c1_43, %c0_44, %c0_45] : memref<6x8x8xf32, #tpu.memory_space<vmem>>, vector<1x8x8xf32>
    %183 = vector.shape_cast %182 : vector<1x8x8xf32> to vector<8x8xf32>
    %184 = vector.shape_cast %181 : vector<8x8xf32> to vector<1x8x8xf32>
    tpu.vector_store %arg6[%c1_43, %c0_44, %c0_45], %184 {strides = array<i32>} : memref<6x8x8xf32, #tpu.memory_space<vmem>>, vector<1x8x8xf32>,
    %c6_i32_46 = arith.constant 6 : i32
    %185 = arith.muli %arg0, %c6_i32_46 : i32
    %c2_i32 = arith.constant 2 : i32
    %186 = arith.addi %185, %c2_i32 : i32
    %c0_47 = arith.constant 0 : index
    %187 = arith.index_cast %186 : i32 to index
    %188 = memref.load %arg3[%c0_47, %187] : memref<5x12xf32, #tpu.memory_space<smem>>
    %c1_48 = arith.constant 1 : index
    %189 = arith.index_cast %186 : i32 to index
    %190 = memref.load %arg3[%c1_48, %189] : memref<5x12xf32, #tpu.memory_space<smem>>
    %c2_49 = arith.constant 2 : index
    %191 = arith.index_cast %186 : i32 to index
    %192 = memref.load %arg3[%c2_49, %191] : memref<5x12xf32, #tpu.memory_space<smem>>
    %c3_50 = arith.constant 3 : index
    %193 = arith.index_cast %186 : i32 to index
    %194 = memref.load %arg3[%c3_50, %193] : memref<5x12xf32, #tpu.memory_space<smem>>
    %c4_51 = arith.constant 4 : index
    %195 = arith.index_cast %186 : i32 to index
    %196 = memref.load %arg3[%c4_51, %195] : memref<5x12xf32, #tpu.memory_space<smem>>
    %c0_52 = arith.constant 0 : index
    %197 = arith.index_cast %186 : i32 to index
    %198 = memref.load %arg4[%c0_52, %197] : memref<5x12xf32, #tpu.memory_space<smem>>
    %c1_53 = arith.constant 1 : index
    %199 = arith.index_cast %186 : i32 to index
    %200 = memref.load %arg4[%c1_53, %199] : memref<5x12xf32, #tpu.memory_space<smem>>
    %c2_54 = arith.constant 2 : index
    %201 = arith.index_cast %186 : i32 to index
    %202 = memref.load %arg4[%c2_54, %201] : memref<5x12xf32, #tpu.memory_space<smem>>
    %c3_55 = arith.constant 3 : index
    %203 = arith.index_cast %186 : i32 to index
    %204 = memref.load %arg4[%c3_55, %203] : memref<5x12xf32, #tpu.memory_space<smem>>
    %c4_56 = arith.constant 4 : index
    %205 = arith.index_cast %186 : i32 to index
    %206 = memref.load %arg4[%c4_56, %205] : memref<5x12xf32, #tpu.memory_space<smem>>
    %c0_57 = arith.constant 0 : index
    %207 = arith.index_cast %186 : i32 to index
    %208 = memref.load %arg5[%c0_57, %207] : memref<5x12xf32, #tpu.memory_space<smem>>
    %c1_58 = arith.constant 1 : index
    %209 = arith.index_cast %186 : i32 to index
    %210 = memref.load %arg5[%c1_58, %209] : memref<5x12xf32, #tpu.memory_space<smem>>
    %c2_59 = arith.constant 2 : index
    %211 = arith.index_cast %186 : i32 to index
    %212 = memref.load %arg5[%c2_59, %211] : memref<5x12xf32, #tpu.memory_space<smem>>
    %c3_60 = arith.constant 3 : index
    %213 = arith.index_cast %186 : i32 to index
    %214 = memref.load %arg5[%c3_60, %213] : memref<5x12xf32, #tpu.memory_space<smem>>
    %c4_61 = arith.constant 4 : index
    %215 = arith.index_cast %186 : i32 to index
    %216 = memref.load %arg5[%c4_61, %215] : memref<5x12xf32, #tpu.memory_space<smem>>
    %c0_i32_62 = arith.constant 0 : i32
    %217 = arith.subi %4, %c0_i32_62 : i32
    %218 = tpu.iota {dimensions = array<i32: 0>} : vector<8x8xi32>
    %219 = vector.broadcast %217 : i32 to vector<8x8xi32>
    %220 = arith.addi %219, %218 : vector<8x8xi32>
    %221 = tpu.iota {dimensions = array<i32: 1>} : vector<8x8xi32>
    %222 = arith.subi %220, %221 : vector<8x8xi32>
    %223 = arith.sitofp %222 : vector<8x8xi32> to vector<8x8xf32>
    %cst_63 = arith.constant 0.000000e+00 : f32
    %224 = vector.broadcast %cst_63 : f32 to vector<8x8xf32>
    %225 = vector.broadcast %188 : f32 to vector<8x8xf32>
    %226 = arith.subf %225, %223 : vector<8x8xf32>
    %227 = arith.mulf %226, %226 : vector<8x8xf32>
    %228 = vector.broadcast %208 : f32 to vector<8x8xf32>
    %229 = arith.mulf %228, %227 : vector<8x8xf32>
    %230 = math.exp %229 : vector<8x8xf32>
    %231 = vector.broadcast %198 : f32 to vector<8x8xf32>
    %232 = arith.mulf %231, %230 : vector<8x8xf32>
    %233 = arith.addf %224, %232 : vector<8x8xf32>
    %234 = vector.broadcast %190 : f32 to vector<8x8xf32>
    %235 = arith.subf %234, %223 : vector<8x8xf32>
    %236 = arith.mulf %235, %235 : vector<8x8xf32>
    %237 = vector.broadcast %210 : f32 to vector<8x8xf32>
    %238 = arith.mulf %237, %236 : vector<8x8xf32>
    %239 = math.exp %238 : vector<8x8xf32>
    %240 = vector.broadcast %200 : f32 to vector<8x8xf32>
    %241 = arith.mulf %240, %239 : vector<8x8xf32>
    %242 = arith.addf %233, %241 : vector<8x8xf32>
    %243 = vector.broadcast %192 : f32 to vector<8x8xf32>
    %244 = arith.subf %243, %223 : vector<8x8xf32>
    %245 = arith.mulf %244, %244 : vector<8x8xf32>
    %246 = vector.broadcast %212 : f32 to vector<8x8xf32>
    %247 = arith.mulf %246, %245 : vector<8x8xf32>
    %248 = math.exp %247 : vector<8x8xf32>
    %249 = vector.broadcast %202 : f32 to vector<8x8xf32>
    %250 = arith.mulf %249, %248 : vector<8x8xf32>
    %251 = arith.addf %242, %250 : vector<8x8xf32>
    %252 = vector.broadcast %194 : f32 to vector<8x8xf32>
    %253 = arith.subf %252, %223 : vector<8x8xf32>
    %254 = arith.mulf %253, %253 : vector<8x8xf32>
    %255 = vector.broadcast %214 : f32 to vector<8x8xf32>
    %256 = arith.mulf %255, %254 : vector<8x8xf32>
    %257 = math.exp %256 : vector<8x8xf32>
    %258 = vector.broadcast %204 : f32 to vector<8x8xf32>
    %259 = arith.mulf %258, %257 : vector<8x8xf32>
    %260 = arith.addf %251, %259 : vector<8x8xf32>
    %261 = vector.broadcast %196 : f32 to vector<8x8xf32>
    %262 = arith.subf %261, %223 : vector<8x8xf32>
    %263 = arith.mulf %262, %262 : vector<8x8xf32>
    %264 = vector.broadcast %216 : f32 to vector<8x8xf32>
    %265 = arith.mulf %264, %263 : vector<8x8xf32>
    %266 = math.exp %265 : vector<8x8xf32>
    %267 = vector.broadcast %206 : f32 to vector<8x8xf32>
    %268 = arith.mulf %267, %266 : vector<8x8xf32>
    %269 = arith.addf %260, %268 : vector<8x8xf32>
    %c0_64 = arith.constant 0 : index
    %c0_65 = arith.constant 0 : index
    %270 = vector.load %arg7[%c0_64, %c0_65] : memref<8x8xf32, #tpu.memory_space<vmem>>, vector<8x8xf32>
    tpu.vector_store %arg7[%c0_64, %c0_65], %269 {strides = array<i32>} : memref<8x8xf32, #tpu.memory_space<vmem>>, vector<8x8xf32>,
    %c0_66 = arith.constant 0 : index
    %c0_67 = arith.constant 0 : index
    %271 = vector.load %arg7[%c0_66, %c0_67] : memref<8x8xf32, #tpu.memory_space<vmem>>, vector<8x8xf32>
    %c2_68 = arith.constant 2 : index
    %c0_69 = arith.constant 0 : index
    %c0_70 = arith.constant 0 : index
    %272 = vector.load %arg6[%c2_68, %c0_69, %c0_70] : memref<6x8x8xf32, #tpu.memory_space<vmem>>, vector<1x8x8xf32>
    %273 = vector.shape_cast %272 : vector<1x8x8xf32> to vector<8x8xf32>
    %274 = vector.shape_cast %271 : vector<8x8xf32> to vector<1x8x8xf32>
    tpu.vector_store %arg6[%c2_68, %c0_69, %c0_70], %274 {strides = array<i32>} : memref<6x8x8xf32, #tpu.memory_space<vmem>>, vector<1x8x8xf32>,
    %c6_i32_71 = arith.constant 6 : i32
    %275 = arith.muli %arg0, %c6_i32_71 : i32
    %c3_i32 = arith.constant 3 : i32
    %276 = arith.addi %275, %c3_i32 : i32
    %c0_72 = arith.constant 0 : index
    %277 = arith.index_cast %276 : i32 to index
    %278 = memref.load %arg3[%c0_72, %277] : memref<5x12xf32, #tpu.memory_space<smem>>
    %c1_73 = arith.constant 1 : index
    %279 = arith.index_cast %276 : i32 to index
    %280 = memref.load %arg3[%c1_73, %279] : memref<5x12xf32, #tpu.memory_space<smem>>
    %c2_74 = arith.constant 2 : index
    %281 = arith.index_cast %276 : i32 to index
    %282 = memref.load %arg3[%c2_74, %281] : memref<5x12xf32, #tpu.memory_space<smem>>
    %c3_75 = arith.constant 3 : index
    %283 = arith.index_cast %276 : i32 to index
    %284 = memref.load %arg3[%c3_75, %283] : memref<5x12xf32, #tpu.memory_space<smem>>
    %c4_76 = arith.constant 4 : index
    %285 = arith.index_cast %276 : i32 to index
    %286 = memref.load %arg3[%c4_76, %285] : memref<5x12xf32, #tpu.memory_space<smem>>
    %c0_77 = arith.constant 0 : index
    %287 = arith.index_cast %276 : i32 to index
    %288 = memref.load %arg4[%c0_77, %287] : memref<5x12xf32, #tpu.memory_space<smem>>
    %c1_78 = arith.constant 1 : index
    %289 = arith.index_cast %276 : i32 to index
    %290 = memref.load %arg4[%c1_78, %289] : memref<5x12xf32, #tpu.memory_space<smem>>
    %c2_79 = arith.constant 2 : index
    %291 = arith.index_cast %276 : i32 to index
    %292 = memref.load %arg4[%c2_79, %291] : memref<5x12xf32, #tpu.memory_space<smem>>
    %c3_80 = arith.constant 3 : index
    %293 = arith.index_cast %276 : i32 to index
    %294 = memref.load %arg4[%c3_80, %293] : memref<5x12xf32, #tpu.memory_space<smem>>
    %c4_81 = arith.constant 4 : index
    %295 = arith.index_cast %276 : i32 to index
    %296 = memref.load %arg4[%c4_81, %295] : memref<5x12xf32, #tpu.memory_space<smem>>
    %c0_82 = arith.constant 0 : index
    %297 = arith.index_cast %276 : i32 to index
    %298 = memref.load %arg5[%c0_82, %297] : memref<5x12xf32, #tpu.memory_space<smem>>
    %c1_83 = arith.constant 1 : index
    %299 = arith.index_cast %276 : i32 to index
    %300 = memref.load %arg5[%c1_83, %299] : memref<5x12xf32, #tpu.memory_space<smem>>
    %c2_84 = arith.constant 2 : index
    %301 = arith.index_cast %276 : i32 to index
    %302 = memref.load %arg5[%c2_84, %301] : memref<5x12xf32, #tpu.memory_space<smem>>
    %c3_85 = arith.constant 3 : index
    %303 = arith.index_cast %276 : i32 to index
    %304 = memref.load %arg5[%c3_85, %303] : memref<5x12xf32, #tpu.memory_space<smem>>
    %c4_86 = arith.constant 4 : index
    %305 = arith.index_cast %276 : i32 to index
    %306 = memref.load %arg5[%c4_86, %305] : memref<5x12xf32, #tpu.memory_space<smem>>
    %c0_i32_87 = arith.constant 0 : i32
    %307 = arith.subi %4, %c0_i32_87 : i32
    %308 = tpu.iota {dimensions = array<i32: 0>} : vector<8x8xi32>
    %309 = vector.broadcast %307 : i32 to vector<8x8xi32>
    %310 = arith.addi %309, %308 : vector<8x8xi32>
    %311 = tpu.iota {dimensions = array<i32: 1>} : vector<8x8xi32>
    %312 = arith.subi %310, %311 : vector<8x8xi32>
    %313 = arith.sitofp %312 : vector<8x8xi32> to vector<8x8xf32>
    %cst_88 = arith.constant 0.000000e+00 : f32
    %314 = vector.broadcast %cst_88 : f32 to vector<8x8xf32>
    %315 = vector.broadcast %278 : f32 to vector<8x8xf32>
    %316 = arith.subf %315, %313 : vector<8x8xf32>
    %317 = arith.mulf %316, %316 : vector<8x8xf32>
    %318 = vector.broadcast %298 : f32 to vector<8x8xf32>
    %319 = arith.mulf %318, %317 : vector<8x8xf32>
    %320 = math.exp %319 : vector<8x8xf32>
    %321 = vector.broadcast %288 : f32 to vector<8x8xf32>
    %322 = arith.mulf %321, %320 : vector<8x8xf32>
    %323 = arith.addf %314, %322 : vector<8x8xf32>
    %324 = vector.broadcast %280 : f32 to vector<8x8xf32>
    %325 = arith.subf %324, %313 : vector<8x8xf32>
    %326 = arith.mulf %325, %325 : vector<8x8xf32>
    %327 = vector.broadcast %300 : f32 to vector<8x8xf32>
    %328 = arith.mulf %327, %326 : vector<8x8xf32>
    %329 = math.exp %328 : vector<8x8xf32>
    %330 = vector.broadcast %290 : f32 to vector<8x8xf32>
    %331 = arith.mulf %330, %329 : vector<8x8xf32>
    %332 = arith.addf %323, %331 : vector<8x8xf32>
    %333 = vector.broadcast %282 : f32 to vector<8x8xf32>
    %334 = arith.subf %333, %313 : vector<8x8xf32>
    %335 = arith.mulf %334, %334 : vector<8x8xf32>
    %336 = vector.broadcast %302 : f32 to vector<8x8xf32>
    %337 = arith.mulf %336, %335 : vector<8x8xf32>
    %338 = math.exp %337 : vector<8x8xf32>
    %339 = vector.broadcast %292 : f32 to vector<8x8xf32>
    %340 = arith.mulf %339, %338 : vector<8x8xf32>
    %341 = arith.addf %332, %340 : vector<8x8xf32>
    %342 = vector.broadcast %284 : f32 to vector<8x8xf32>
    %343 = arith.subf %342, %313 : vector<8x8xf32>
    %344 = arith.mulf %343, %343 : vector<8x8xf32>
    %345 = vector.broadcast %304 : f32 to vector<8x8xf32>
    %346 = arith.mulf %345, %344 : vector<8x8xf32>
    %347 = math.exp %346 : vector<8x8xf32>
    %348 = vector.broadcast %294 : f32 to vector<8x8xf32>
    %349 = arith.mulf %348, %347 : vector<8x8xf32>
    %350 = arith.addf %341, %349 : vector<8x8xf32>
    %351 = vector.broadcast %286 : f32 to vector<8x8xf32>
    %352 = arith.subf %351, %313 : vector<8x8xf32>
    %353 = arith.mulf %352, %352 : vector<8x8xf32>
    %354 = vector.broadcast %306 : f32 to vector<8x8xf32>
    %355 = arith.mulf %354, %353 : vector<8x8xf32>
    %356 = math.exp %355 : vector<8x8xf32>
    %357 = vector.broadcast %296 : f32 to vector<8x8xf32>
    %358 = arith.mulf %357, %356 : vector<8x8xf32>
    %359 = arith.addf %350, %358 : vector<8x8xf32>
    %c0_89 = arith.constant 0 : index
    %c0_90 = arith.constant 0 : index
    %360 = vector.load %arg7[%c0_89, %c0_90] : memref<8x8xf32, #tpu.memory_space<vmem>>, vector<8x8xf32>
    tpu.vector_store %arg7[%c0_89, %c0_90], %359 {strides = array<i32>} : memref<8x8xf32, #tpu.memory_space<vmem>>, vector<8x8xf32>,
    %c0_91 = arith.constant 0 : index
    %c0_92 = arith.constant 0 : index
    %361 = vector.load %arg7[%c0_91, %c0_92] : memref<8x8xf32, #tpu.memory_space<vmem>>, vector<8x8xf32>
    %c3_93 = arith.constant 3 : index
    %c0_94 = arith.constant 0 : index
    %c0_95 = arith.constant 0 : index
    %362 = vector.load %arg6[%c3_93, %c0_94, %c0_95] : memref<6x8x8xf32, #tpu.memory_space<vmem>>, vector<1x8x8xf32>
    %363 = vector.shape_cast %362 : vector<1x8x8xf32> to vector<8x8xf32>
    %364 = vector.shape_cast %361 : vector<8x8xf32> to vector<1x8x8xf32>
    tpu.vector_store %arg6[%c3_93, %c0_94, %c0_95], %364 {strides = array<i32>} : memref<6x8x8xf32, #tpu.memory_space<vmem>>, vector<1x8x8xf32>,
    %c6_i32_96 = arith.constant 6 : i32
    %365 = arith.muli %arg0, %c6_i32_96 : i32
    %c4_i32 = arith.constant 4 : i32
    %366 = arith.addi %365, %c4_i32 : i32
    %c0_97 = arith.constant 0 : index
    %367 = arith.index_cast %366 : i32 to index
    %368 = memref.load %arg3[%c0_97, %367] : memref<5x12xf32, #tpu.memory_space<smem>>
    %c1_98 = arith.constant 1 : index
    %369 = arith.index_cast %366 : i32 to index
    %370 = memref.load %arg3[%c1_98, %369] : memref<5x12xf32, #tpu.memory_space<smem>>
    %c2_99 = arith.constant 2 : index
    %371 = arith.index_cast %366 : i32 to index
    %372 = memref.load %arg3[%c2_99, %371] : memref<5x12xf32, #tpu.memory_space<smem>>
    %c3_100 = arith.constant 3 : index
    %373 = arith.index_cast %366 : i32 to index
    %374 = memref.load %arg3[%c3_100, %373] : memref<5x12xf32, #tpu.memory_space<smem>>
    %c4_101 = arith.constant 4 : index
    %375 = arith.index_cast %366 : i32 to index
    %376 = memref.load %arg3[%c4_101, %375] : memref<5x12xf32, #tpu.memory_space<smem>>
    %c0_102 = arith.constant 0 : index
    %377 = arith.index_cast %366 : i32 to index
    %378 = memref.load %arg4[%c0_102, %377] : memref<5x12xf32, #tpu.memory_space<smem>>
    %c1_103 = arith.constant 1 : index
    %379 = arith.index_cast %366 : i32 to index
    %380 = memref.load %arg4[%c1_103, %379] : memref<5x12xf32, #tpu.memory_space<smem>>
    %c2_104 = arith.constant 2 : index
    %381 = arith.index_cast %366 : i32 to index
    %382 = memref.load %arg4[%c2_104, %381] : memref<5x12xf32, #tpu.memory_space<smem>>
    %c3_105 = arith.constant 3 : index
    %383 = arith.index_cast %366 : i32 to index
    %384 = memref.load %arg4[%c3_105, %383] : memref<5x12xf32, #tpu.memory_space<smem>>
    %c4_106 = arith.constant 4 : index
    %385 = arith.index_cast %366 : i32 to index
    %386 = memref.load %arg4[%c4_106, %385] : memref<5x12xf32, #tpu.memory_space<smem>>
    %c0_107 = arith.constant 0 : index
    %387 = arith.index_cast %366 : i32 to index
    %388 = memref.load %arg5[%c0_107, %387] : memref<5x12xf32, #tpu.memory_space<smem>>
    %c1_108 = arith.constant 1 : index
    %389 = arith.index_cast %366 : i32 to index
    %390 = memref.load %arg5[%c1_108, %389] : memref<5x12xf32, #tpu.memory_space<smem>>
    %c2_109 = arith.constant 2 : index
    %391 = arith.index_cast %366 : i32 to index
    %392 = memref.load %arg5[%c2_109, %391] : memref<5x12xf32, #tpu.memory_space<smem>>
    %c3_110 = arith.constant 3 : index
    %393 = arith.index_cast %366 : i32 to index
    %394 = memref.load %arg5[%c3_110, %393] : memref<5x12xf32, #tpu.memory_space<smem>>
    %c4_111 = arith.constant 4 : index
    %395 = arith.index_cast %366 : i32 to index
    %396 = memref.load %arg5[%c4_111, %395] : memref<5x12xf32, #tpu.memory_space<smem>>
    %c0_i32_112 = arith.constant 0 : i32
    %397 = arith.subi %4, %c0_i32_112 : i32
    %398 = tpu.iota {dimensions = array<i32: 0>} : vector<8x8xi32>
    %399 = vector.broadcast %397 : i32 to vector<8x8xi32>
    %400 = arith.addi %399, %398 : vector<8x8xi32>
    %401 = tpu.iota {dimensions = array<i32: 1>} : vector<8x8xi32>
    %402 = arith.subi %400, %401 : vector<8x8xi32>
    %403 = arith.sitofp %402 : vector<8x8xi32> to vector<8x8xf32>
    %cst_113 = arith.constant 0.000000e+00 : f32
    %404 = vector.broadcast %cst_113 : f32 to vector<8x8xf32>
    %405 = vector.broadcast %368 : f32 to vector<8x8xf32>
    %406 = arith.subf %405, %403 : vector<8x8xf32>
    %407 = arith.mulf %406, %406 : vector<8x8xf32>
    %408 = vector.broadcast %388 : f32 to vector<8x8xf32>
    %409 = arith.mulf %408, %407 : vector<8x8xf32>
    %410 = math.exp %409 : vector<8x8xf32>
    %411 = vector.broadcast %378 : f32 to vector<8x8xf32>
    %412 = arith.mulf %411, %410 : vector<8x8xf32>
    %413 = arith.addf %404, %412 : vector<8x8xf32>
    %414 = vector.broadcast %370 : f32 to vector<8x8xf32>
    %415 = arith.subf %414, %403 : vector<8x8xf32>
    %416 = arith.mulf %415, %415 : vector<8x8xf32>
    %417 = vector.broadcast %390 : f32 to vector<8x8xf32>
    %418 = arith.mulf %417, %416 : vector<8x8xf32>
    %419 = math.exp %418 : vector<8x8xf32>
    %420 = vector.broadcast %380 : f32 to vector<8x8xf32>
    %421 = arith.mulf %420, %419 : vector<8x8xf32>
    %422 = arith.addf %413, %421 : vector<8x8xf32>
    %423 = vector.broadcast %372 : f32 to vector<8x8xf32>
    %424 = arith.subf %423, %403 : vector<8x8xf32>
    %425 = arith.mulf %424, %424 : vector<8x8xf32>
    %426 = vector.broadcast %392 : f32 to vector<8x8xf32>
    %427 = arith.mulf %426, %425 : vector<8x8xf32>
    %428 = math.exp %427 : vector<8x8xf32>
    %429 = vector.broadcast %382 : f32 to vector<8x8xf32>
    %430 = arith.mulf %429, %428 : vector<8x8xf32>
    %431 = arith.addf %422, %430 : vector<8x8xf32>
    %432 = vector.broadcast %374 : f32 to vector<8x8xf32>
    %433 = arith.subf %432, %403 : vector<8x8xf32>
    %434 = arith.mulf %433, %433 : vector<8x8xf32>
    %435 = vector.broadcast %394 : f32 to vector<8x8xf32>
    %436 = arith.mulf %435, %434 : vector<8x8xf32>
    %437 = math.exp %436 : vector<8x8xf32>
    %438 = vector.broadcast %384 : f32 to vector<8x8xf32>
    %439 = arith.mulf %438, %437 : vector<8x8xf32>
    %440 = arith.addf %431, %439 : vector<8x8xf32>
    %441 = vector.broadcast %376 : f32 to vector<8x8xf32>
    %442 = arith.subf %441, %403 : vector<8x8xf32>
    %443 = arith.mulf %442, %442 : vector<8x8xf32>
    %444 = vector.broadcast %396 : f32 to vector<8x8xf32>
    %445 = arith.mulf %444, %443 : vector<8x8xf32>
    %446 = math.exp %445 : vector<8x8xf32>
    %447 = vector.broadcast %386 : f32 to vector<8x8xf32>
    %448 = arith.mulf %447, %446 : vector<8x8xf32>
    %449 = arith.addf %440, %448 : vector<8x8xf32>
    %c0_114 = arith.constant 0 : index
    %c0_115 = arith.constant 0 : index
    %450 = vector.load %arg7[%c0_114, %c0_115] : memref<8x8xf32, #tpu.memory_space<vmem>>, vector<8x8xf32>
    tpu.vector_store %arg7[%c0_114, %c0_115], %449 {strides = array<i32>} : memref<8x8xf32, #tpu.memory_space<vmem>>, vector<8x8xf32>,
    %c0_116 = arith.constant 0 : index
    %c0_117 = arith.constant 0 : index
    %451 = vector.load %arg7[%c0_116, %c0_117] : memref<8x8xf32, #tpu.memory_space<vmem>>, vector<8x8xf32>
    %c4_118 = arith.constant 4 : index
    %c0_119 = arith.constant 0 : index
    %c0_120 = arith.constant 0 : index
    %452 = vector.load %arg6[%c4_118, %c0_119, %c0_120] : memref<6x8x8xf32, #tpu.memory_space<vmem>>, vector<1x8x8xf32>
    %453 = vector.shape_cast %452 : vector<1x8x8xf32> to vector<8x8xf32>
    %454 = vector.shape_cast %451 : vector<8x8xf32> to vector<1x8x8xf32>
    tpu.vector_store %arg6[%c4_118, %c0_119, %c0_120], %454 {strides = array<i32>} : memref<6x8x8xf32, #tpu.memory_space<vmem>>, vector<1x8x8xf32>,
    %c6_i32_121 = arith.constant 6 : i32
    %455 = arith.muli %arg0, %c6_i32_121 : i32
    %c5_i32 = arith.constant 5 : i32
    %456 = arith.addi %455, %c5_i32 : i32
    %c0_122 = arith.constant 0 : index
    %457 = arith.index_cast %456 : i32 to index
    %458 = memref.load %arg3[%c0_122, %457] : memref<5x12xf32, #tpu.memory_space<smem>>
    %c1_123 = arith.constant 1 : index
    %459 = arith.index_cast %456 : i32 to index
    %460 = memref.load %arg3[%c1_123, %459] : memref<5x12xf32, #tpu.memory_space<smem>>
    %c2_124 = arith.constant 2 : index
    %461 = arith.index_cast %456 : i32 to index
    %462 = memref.load %arg3[%c2_124, %461] : memref<5x12xf32, #tpu.memory_space<smem>>
    %c3_125 = arith.constant 3 : index
    %463 = arith.index_cast %456 : i32 to index
    %464 = memref.load %arg3[%c3_125, %463] : memref<5x12xf32, #tpu.memory_space<smem>>
    %c4_126 = arith.constant 4 : index
    %465 = arith.index_cast %456 : i32 to index
    %466 = memref.load %arg3[%c4_126, %465] : memref<5x12xf32, #tpu.memory_space<smem>>
    %c0_127 = arith.constant 0 : index
    %467 = arith.index_cast %456 : i32 to index
    %468 = memref.load %arg4[%c0_127, %467] : memref<5x12xf32, #tpu.memory_space<smem>>
    %c1_128 = arith.constant 1 : index
    %469 = arith.index_cast %456 : i32 to index
    %470 = memref.load %arg4[%c1_128, %469] : memref<5x12xf32, #tpu.memory_space<smem>>
    %c2_129 = arith.constant 2 : index
    %471 = arith.index_cast %456 : i32 to index
    %472 = memref.load %arg4[%c2_129, %471] : memref<5x12xf32, #tpu.memory_space<smem>>
    %c3_130 = arith.constant 3 : index
    %473 = arith.index_cast %456 : i32 to index
    %474 = memref.load %arg4[%c3_130, %473] : memref<5x12xf32, #tpu.memory_space<smem>>
    %c4_131 = arith.constant 4 : index
    %475 = arith.index_cast %456 : i32 to index
    %476 = memref.load %arg4[%c4_131, %475] : memref<5x12xf32, #tpu.memory_space<smem>>
    %c0_132 = arith.constant 0 : index
    %477 = arith.index_cast %456 : i32 to index
    %478 = memref.load %arg5[%c0_132, %477] : memref<5x12xf32, #tpu.memory_space<smem>>
    %c1_133 = arith.constant 1 : index
    %479 = arith.index_cast %456 : i32 to index
    %480 = memref.load %arg5[%c1_133, %479] : memref<5x12xf32, #tpu.memory_space<smem>>
    %c2_134 = arith.constant 2 : index
    %481 = arith.index_cast %456 : i32 to index
    %482 = memref.load %arg5[%c2_134, %481] : memref<5x12xf32, #tpu.memory_space<smem>>
    %c3_135 = arith.constant 3 : index
    %483 = arith.index_cast %456 : i32 to index
    %484 = memref.load %arg5[%c3_135, %483] : memref<5x12xf32, #tpu.memory_space<smem>>
    %c4_136 = arith.constant 4 : index
    %485 = arith.index_cast %456 : i32 to index
    %486 = memref.load %arg5[%c4_136, %485] : memref<5x12xf32, #tpu.memory_space<smem>>
    %c0_i32_137 = arith.constant 0 : i32
    %487 = arith.subi %4, %c0_i32_137 : i32
    %488 = tpu.iota {dimensions = array<i32: 0>} : vector<8x8xi32>
    %489 = vector.broadcast %487 : i32 to vector<8x8xi32>
    %490 = arith.addi %489, %488 : vector<8x8xi32>
    %491 = tpu.iota {dimensions = array<i32: 1>} : vector<8x8xi32>
    %492 = arith.subi %490, %491 : vector<8x8xi32>
    %493 = arith.sitofp %492 : vector<8x8xi32> to vector<8x8xf32>
    %cst_138 = arith.constant 0.000000e+00 : f32
    %494 = vector.broadcast %cst_138 : f32 to vector<8x8xf32>
    %495 = vector.broadcast %458 : f32 to vector<8x8xf32>
    %496 = arith.subf %495, %493 : vector<8x8xf32>
    %497 = arith.mulf %496, %496 : vector<8x8xf32>
    %498 = vector.broadcast %478 : f32 to vector<8x8xf32>
    %499 = arith.mulf %498, %497 : vector<8x8xf32>
    %500 = math.exp %499 : vector<8x8xf32>
    %501 = vector.broadcast %468 : f32 to vector<8x8xf32>
    %502 = arith.mulf %501, %500 : vector<8x8xf32>
    %503 = arith.addf %494, %502 : vector<8x8xf32>
    %504 = vector.broadcast %460 : f32 to vector<8x8xf32>
    %505 = arith.subf %504, %493 : vector<8x8xf32>
    %506 = arith.mulf %505, %505 : vector<8x8xf32>
    %507 = vector.broadcast %480 : f32 to vector<8x8xf32>
    %508 = arith.mulf %507, %506 : vector<8x8xf32>
    %509 = math.exp %508 : vector<8x8xf32>
    %510 = vector.broadcast %470 : f32 to vector<8x8xf32>
    %511 = arith.mulf %510, %509 : vector<8x8xf32>
    %512 = arith.addf %503, %511 : vector<8x8xf32>
    %513 = vector.broadcast %462 : f32 to vector<8x8xf32>
    %514 = arith.subf %513, %493 : vector<8x8xf32>
    %515 = arith.mulf %514, %514 : vector<8x8xf32>
    %516 = vector.broadcast %482 : f32 to vector<8x8xf32>
    %517 = arith.mulf %516, %515 : vector<8x8xf32>
    %518 = math.exp %517 : vector<8x8xf32>
    %519 = vector.broadcast %472 : f32 to vector<8x8xf32>
    %520 = arith.mulf %519, %518 : vector<8x8xf32>
    %521 = arith.addf %512, %520 : vector<8x8xf32>
    %522 = vector.broadcast %464 : f32 to vector<8x8xf32>
    %523 = arith.subf %522, %493 : vector<8x8xf32>
    %524 = arith.mulf %523, %523 : vector<8x8xf32>
    %525 = vector.broadcast %484 : f32 to vector<8x8xf32>
    %526 = arith.mulf %525, %524 : vector<8x8xf32>
    %527 = math.exp %526 : vector<8x8xf32>
    %528 = vector.broadcast %474 : f32 to vector<8x8xf32>
    %529 = arith.mulf %528, %527 : vector<8x8xf32>
    %530 = arith.addf %521, %529 : vector<8x8xf32>
    %531 = vector.broadcast %466 : f32 to vector<8x8xf32>
    %532 = arith.subf %531, %493 : vector<8x8xf32>
    %533 = arith.mulf %532, %532 : vector<8x8xf32>
    %534 = vector.broadcast %486 : f32 to vector<8x8xf32>
    %535 = arith.mulf %534, %533 : vector<8x8xf32>
    %536 = math.exp %535 : vector<8x8xf32>
    %537 = vector.broadcast %476 : f32 to vector<8x8xf32>
    %538 = arith.mulf %537, %536 : vector<8x8xf32>
    %539 = arith.addf %530, %538 : vector<8x8xf32>
    %c0_139 = arith.constant 0 : index
    %c0_140 = arith.constant 0 : index
    %540 = vector.load %arg7[%c0_139, %c0_140] : memref<8x8xf32, #tpu.memory_space<vmem>>, vector<8x8xf32>
    tpu.vector_store %arg7[%c0_139, %c0_140], %539 {strides = array<i32>} : memref<8x8xf32, #tpu.memory_space<vmem>>, vector<8x8xf32>,
    %c0_141 = arith.constant 0 : index
    %c0_142 = arith.constant 0 : index
    %541 = vector.load %arg7[%c0_141, %c0_142] : memref<8x8xf32, #tpu.memory_space<vmem>>, vector<8x8xf32>
    %c5 = arith.constant 5 : index
    %c0_143 = arith.constant 0 : index
    %c0_144 = arith.constant 0 : index
    %542 = vector.load %arg6[%c5, %c0_143, %c0_144] : memref<6x8x8xf32, #tpu.memory_space<vmem>>, vector<1x8x8xf32>
    %543 = vector.shape_cast %542 : vector<1x8x8xf32> to vector<8x8xf32>
    %544 = vector.shape_cast %541 : vector<8x8xf32> to vector<1x8x8xf32>
    tpu.vector_store %arg6[%c5, %c0_143, %c0_144], %544 {strides = array<i32>} : memref<6x8x8xf32, #tpu.memory_space<vmem>>, vector<1x8x8xf32>,
    return
  }
  func.func @transform_0(%arg0: i32, %arg1: i32, %arg2: i32) -> (i32, i32) {
    %c0_i32 = arith.constant 0 : i32
    %c0_i32_0 = arith.constant 0 : i32
    %c0_i32_1 = arith.constant 0 : i32
    return %c0_i32, %c0_i32_0 : i32, i32
  }
  func.func @transform_1(%arg0: i32, %arg1: i32, %arg2: i32) -> (i32, i32) {
    %c0_i32 = arith.constant 0 : i32
    %c0_i32_0 = arith.constant 0 : i32
    %c0_i32_1 = arith.constant 0 : i32
    return %c0_i32, %c0_i32_0 : i32, i32
  }
  func.func @transform_2(%arg0: i32, %arg1: i32, %arg2: i32) -> (i32, i32) {
    %c0_i32 = arith.constant 0 : i32
    %c0_i32_0 = arith.constant 0 : i32
    %c0_i32_1 = arith.constant 0 : i32
    return %c0_i32, %c0_i32_0 : i32, i32
  }
  func.func @transform_3(%arg0: i32, %arg1: i32, %arg2: i32) -> (i32, i32, i32) {
    %c0_i32 = arith.constant 0 : i32
    return %arg0, %arg1, %arg2 : i32, i32, i32
  }
}

</mosaic_0001>

<bundles_post_ra>
// kernel: tpu_custom_call.1
= control target key start
LH: loop header
LB: loop body
LE: loop exit
PB: predicated region body
PF: predicated region fallthrough
CT: control target
= control target key end

     0   :  { %s1744_s0 = inlined_call_operand.hbm [shape: f32[5,12], index: 0, kind: input, shape index: {}]   ;;  %s1745_s1 = inlined_call_operand.hbm [shape: f32[5,12], index: 1, kind: input, shape index: {}]   ;;  %s1746_s2 = inlined_call_operand.hbm [shape: f32[5,12], index: 2, kind: input, shape index: {}]   ;;  %s1747_s3 = inlined_call_operand.vmem [shape: f32[12,8,8], index: 3, kind: output, shape index: {}]  }
   0x1   :  { %1748 = sst [smem:[#allocation10_spill]] %s1744_s0 }
   0x2   :  { %8 = vsyncpa [#allocation4], 0 }
   0x3   :  { %9 = vsyncpa [#allocation6], 0  ;;  %s1154_s12 = smov 0   ;;  %s1156_s13 = smov 0  }
   0x4   :  { %s1158_s14 = smov 0  }
   0x5 LB: > { %s855_s15 = sadd.s32 4294967295, %s1129_s14   ;;  %p857_p0 = scmp.ge.s32.totalorder %s1129_s14, 1  ;;  %s1129_s14 = sphi %s1158_s14, %s15_s14   ;;  %s1125_s13 = sphi %s1156_s13, %s1754_s13   ;;  %s1121_s12 = sphi %s1154_s12, %s1753_s12  }
   0x6   : > { %p132_p1 = scmp.lt.s32.totalorder %s1129_s14, 3  ;;  %p1172_p2 = scmp.eq.s32.totalorder %s855_s15, 0 }
   0x7   : > { %s34_s18 = sadd.s32 1, %s1125_s13  ;;  %s1060_s22 = scalar_lea.hbm %s1745_s1, 128 }
   0x8   : > { %p1176_p3 = pnand %p857_p0, %p132_p1  ;;  %p36_p5 = scmp.ge.s32.totalorder %s34_s18, 2 }
   0x9   : > { %p1061_p7 = scmp.ne.s32.totalorder %s1745_s1, %s1060_s22  ;;  %p1067_p11 = scmp.lt.u32.totalorder %s1060_s22, %s1745_s1 }
   0xa   : > { %p957_p4 = pneg %p1176_p3  ;;  %s1756_s18 = smov (%p36_p5, %s34_s18), 0 }
   0xc   : > { %p1185_p6 = pnand %p1172_p2, %p957_p4 }
   0xe   : > { %p1062_p8 = pneg %p1185_p6 }
  0x10   : > { %p1063_p9 = pnand %p1062_p8, %p1061_p7 }
  0x12   : > { %p1064_p10 = pneg %p1063_p9 }
  0x14   : > { %p1069_p12 = pnand %p1067_p11, %p1064_p10 }
  0x16   : > { %1072 = shalt.err (!%p1069_p12)
}
  0x17   : > { %s1131_s27 = smov [#allocation5]   ;;  %s1752_s0 = sld [smem:[#allocation10_spill]] }
  0x18   : > { %963 = dma.hbm_to_smem (!%p1185_p6), %s1745_s1, 128, %s1131_s27, [#allocation6]  }
  0x1d   : > { %s1073_s5 = scalar_lea.hbm %s1752_s0, 128 }
  0x1e   : > { %p1074_p13 = scmp.ne.s32.totalorder %s1752_s0, %s1073_s5  ;;  %p1080_p4 = scmp.lt.u32.totalorder %s1073_s5, %s1752_s0 }
  0x20   : > { %p1076_p0 = pnand %p1074_p13, %p1062_p8 }
  0x22   : > { %p1077_p1 = pneg %p1076_p0 }
  0x24   : > { %p1082_p5 = pnand %p1080_p4, %p1077_p1 }
  0x26   : > { %1085 = shalt.err (!%p1082_p5)
}
  0x27   : > { %s1132_s10 = smov [#allocation3]   ;;  %s1086_s22 = scalar_lea.hbm %s1746_s2, 128 }
  0x28   : > { %960 = dma.hbm_to_smem (!%p1185_p6), %s1752_s0, 128, %s1132_s10, [#allocation4]  }
  0x29   : > { %p1087_p7 = scmp.ne.s32.totalorder %s1746_s2, %s1086_s22  ;;  %p1093_p11 = scmp.lt.u32.totalorder %s1086_s22, %s1746_s2 }
  0x2b   : > { %p1089_p9 = pnand %p1087_p7, %p1062_p8 }
  0x2d   : > { %p1090_p10 = pneg %p1089_p9 }
  0x2f   : > { %p1095_p12 = pnand %p1093_p11, %p1090_p10 }
  0x31   : > { %1098 = shalt.err (!%p1095_p12)
}
  0x32   : > { %s1133_s27 = smov [#allocation7]   ;;  %174 = sbr.rel (%p1176_p3) target bundleno = 201 (0xc9), region = 32 }
  0x33   : > { %966 = dma.hbm_to_smem (!%p1185_p6), %s1746_s2, 128, %s1133_s27, [#allocation6]  }
  0x39   : > { %1112 = dma.done.wait (%p1172_p2), [#allocation4], 128  }
  0x3a   : > { %1114 = vsyncadd (%p1172_p2), [#allocation4], 4294967168 }
  0x3b   : > { %1116 = dma.done.wait (%p1172_p2), [#allocation6], 256  }
  0x3c   : > { %1118 = vsyncadd (%p1172_p2), [#allocation6], 4294967040 }
  0x3d   : > { %188 = sfence }
  0x3e   : > { %s1255_s19 = smul.u32 6, %s1121_s12  ;;  %v256_v0 = vlaneseq  ;;  %vm314_vm0 = vcmask 64512  }
  0x40   : > { %s225_s17 = sld [smem:[#allocation3 + %s1255_s19]]  ;;  %s226_s30 = sshra.s32 %s1255_s19, 7  ;;  %v257_v1 = vshrl.u32 %v256_v0, 7  ;;  %v261_v2 = vand.u32 127, %v256_v0 }
  0x41   : > { %s897_s4 = sshll.u32 %s226_s30, 7  ;;  %s231_s5 = sand.u32 127, %s1255_s19 }
  0x42   : > { %s898_s6 = sadd.s32 128, %s897_s4  ;;  %s900_s7 = sadd.s32 256, %s897_s4  ;;  %v259_v3 = vadd.s32 4294967295, %v257_v1 }
  0x43   : > { %s232_s16 = sadd.s32 %s898_s6, %s231_s5  ;;  %s236_s8 = sadd.s32 %s900_s7, %s231_s5 }
  0x44   : > { %s233_s9 = sld [smem:[#allocation3 + %s232_s16]]  ;;  %v262_v4 = vsub.s32 %v259_v3, %v261_v2  ;;  %s902_s10 = sadd.s32 384, %s897_s4 }
  0x45   : > { %s237_s12 = sld [smem:[#allocation3 + %s236_s8]]  ;;  %s904_s11 = sadd.s32 512, %s897_s4 }
  0x46   : > { %s1260_s15 = sadd.s32 %s902_s10, %s231_s5  ;;  %s1262_s20 = sadd.s32 %s904_s11, %s231_s5  ;;  %v1264_v5 = vcvt.s32.f32 %v262_v4  ;;  %v264_v6 = vstv %s225_s17 }
  0x47   : > { %s241_s21 = sld [smem:[#allocation3 + %s1260_s15]]  ;;  %p209_p2 = scmp.lt.s32.totalorder %s1255_s19, 11 }
  0x48   : > { %s245_s22 = sld [smem:[#allocation3 + %s1262_s20]]  ;;  %v265_v7 = vsub.f32 %v264_v6, %v1264_v5  ;;  %s1287_s30 = sadd.s32 1, %s1255_s19 }
  0x49   : > { %s1269_s23 = sld [smem:[#allocation5 + %s1255_s19]]  ;;  %s320_s5 = sshra.s32 %s1287_s30, 7 }
  0x4a   : > { %s1271_s24 = sld [smem:[#allocation5 + %s232_s16]]  ;;  %v274_v8 = vstv %s233_s9  ;;  %v266_v12 = vmul.f32 %v265_v7, %v265_v7  ;;  %s1298_s7 = sshll.u32 %s320_s5, 7 }
  0x4b   : > { %s1274_s25 = sld [smem:[#allocation5 + %s236_s8]]  ;;  %v284_v9 = vstv %s237_s12  ;;  %v275_v10 = vsub.f32 %v274_v8, %v1264_v5  ;;  %s906_s9 = sadd.s32 128, %s1298_s7 }
  0x4c   : > { %s251_s26 = sld [smem:[#allocation7 + %s1255_s19]]  ;;  %v285_v11 = vsub.f32 %v284_v9, %v1264_v5 }
  0x4d   : > { %s252_s27 = sld [smem:[#allocation7 + %s232_s16]]  ;;  %v294_v13 = vstv %s241_s21  ;;  %v276_v15 = vmul.f32 %v275_v10, %v275_v10  ;;  %s1301_s16 = sand.u32 127, %s1287_s30 }
  0x4e   : > { %s253_s28 = sld [smem:[#allocation7 + %s236_s8]]  ;;  %v304_v14 = vstv %s245_s22  ;;  %v286_v16 = vmul.f32 %v285_v11, %v285_v11  ;;  %v295_v17 = vsub.f32 %v294_v13, %v1264_v5  ;;  %s1311_s10 = sadd.s32 %s906_s9, %s1301_s16 }
  0x4f   : > { %s1280_s29 = sld [smem:[#allocation7 + %s1260_s15]]  ;;  %v305_v18 = vsub.f32 %v304_v14, %v1264_v5  ;;  %s910_s22 = sadd.s32 384, %s1298_s7  ;;  %v271_v43 = vstv %s1269_s23 }
  0x50   : > { %s1283_s17 = sld [smem:[#allocation7 + %s1262_s20]]  ;;  %v296_v20 = vmul.f32 %v295_v17, %v295_v17  ;;  %v281_v46 = vstv %s1271_s24 }
  0x51   : > { %s1292_s4 = sld [smem:[#allocation3 + %s1287_s30]]  ;;  %v306_v21 = vmul.f32 %v305_v18, %v305_v18  ;;  %v291_v51 = vstv %s1274_s25 }
  0x52   : > { %s1296_s6 = scalar_select %p209_p2, %s1255_s19, 11  ;;  %v267_v19 = vstv %s251_s26 }
  0x53   : > { %s1304_s8 = sld [smem:[#allocation5 + %s1260_s15]]  ;;  %v268_v22 = vmul.f32 %v267_v19, %v266_v12  ;;  %v277_v23 = vstv %s252_s27  ;;  %s908_s15 = sadd.s32 256, %s1298_s7 }
  0x54   : > { %v287_v24 = vstv %s253_s28  ;;  %v278_v25 = vmul.f32 %v277_v23, %v276_v15  ;;  %s865_s12 = sshll.u32 %s1296_s6, 3  ;;  %s327_s11 = sld [smem:[#allocation3 + %s1311_s10]] }
  0x55   : > { %v288_v26 = vmul.f32 %v287_v24, %v286_v16  ;;  %v297_v27 = vstv %s1280_s29  ;;  %v269_v29 = vmul.f32 1.442695, %v268_v22  ;;  %s330_s21 = sadd.s32 %s908_s15, %s1301_s16  ;;  %s334_s27 = sadd.s32 %s910_s22, %s1301_s16 }
  0x56   : > { %v307_v28 = vstv %s1283_s17  ;;  %v298_v30 = vmul.f32 %v297_v27, %v296_v20  ;;  %v279_v32 = vmul.f32 1.442695, %v278_v25  ;;  %s331_s26 = sld [smem:[#allocation3 + %s330_s21]]  ;;  %s912_s29 = sadd.s32 512, %s1298_s7 }
  0x57   : > { %v308_v31 = vmul.f32 %v307_v28, %v306_v21  ;;  %v289_v33 = vmul.f32 1.442695, %v288_v26  ;;  %1000 = vpow2.f32 %v269_v29  ;;  %s335_s28 = sld [smem:[#allocation3 + %s334_s27]]  ;;  %v350_v36 = vstv %s1292_s4  ;;  %s1324_s5 = sadd.s32 %s912_s29, %s1301_s16 }
  0x58   : > { %v299_v34 = vmul.f32 1.442695, %v298_v30  ;;  %1002 = vpow2.f32 %v279_v32  ;;  %s1321_s17 = sld [smem:[#allocation5 + %s1262_s20]]  ;;  %s1329_s15 = scalar_lea.vmem %s1747_s3, %s865_s12  ;;  %v351_v37 = vsub.f32 %v350_v36, %v1264_v5 }
  0x59   : > { %v309_v35 = vmul.f32 1.442695, %v308_v31  ;;  %1004 = vpow2.f32 %v289_v33  ;;  %s1332_s0 = sld [smem:[#allocation3 + %s1324_s5]]  ;;  %v301_v52 = vstv %s1304_s8 }
  0x5a   : > { %1006 = vpow2.f32 %v299_v34  ;;  %s1335_s7 = sld [smem:[#allocation5 + %s1287_s30]]  ;;  %v360_v38 = vstv %s327_s11  ;;  %v352_v44 = vmul.f32 %v351_v37, %v351_v37 }
  0x5b   : > { %1008 = vpow2.f32 %v309_v35  ;;  %s1338_s4 = sld [smem:[#allocation5 + %s1311_s10]]  ;;  %v361_v39 = vsub.f32 %v360_v38, %v1264_v5 }
  0x5c   : > { %s1341_s20 = sld [smem:[#allocation5 + %s330_s21]]  ;;  %v370_v40 = vstv %s331_s26 }
  0x5d   : > { %s1344_s16 = sld [smem:[#allocation7 + %s1287_s30]]  ;;  %v371_v41 = vsub.f32 %v370_v40, %v1264_v5  ;;  %v380_v42 = vstv %s335_s28  ;;  %v362_v47 = vmul.f32 %v361_v39, %v361_v39 }
  0x5e   : > { %s1348_s12 = sld [smem:[#allocation7 + %s1311_s10]]  ;;  %v381_v45 = vsub.f32 %v380_v42, %v1264_v5  ;;  %s1363_s10 = sadd.s32 2, %s1255_s19  ;;  %v311_v56 = vstv %s1321_s17 }
  0x5f   : > { %s1350_s22 = sld [smem:[#allocation7 + %s330_s21]]  ;;  %v372_v48 = vmul.f32 %v371_v41, %v371_v41  ;;  %v390_v49 = vstv %s1332_s0  ;;  %s406_s21 = sshra.s32 %s1363_s10, 7 }
  0x60   : > { %s1352_s29 = sld [smem:[#allocation5 + %s334_s27]]  ;;  %v382_v53 = vmul.f32 %v381_v45, %v381_v45  ;;  %s1373_s23 = sshll.u32 %s406_s21, 7  ;;  %v391_v58 = vsub.f32 %v390_v49, %v1264_v5  ;;  %v357_v35 = vstv %s1335_s7 }
  0x61   : > { %s1354_s6 = sld [smem:[#allocation7 + %s334_s27]]  ;;  %v1001_v50 = vpop.eup %1000  ;;  %s1376_s26 = sand.u32 127, %s1363_s10  ;;  %v367_v36 = vstv %s1338_s4 }
  0x62   : > { %s1359_s30 = sld [smem:[#allocation7 + %s1324_s5]]  ;;  %v1003_v54 = vpop.eup %1002  ;;  %v272_v55 = vmul.f32 %v1001_v50, %v271_v43  ;;  %s914_s0 = sadd.s32 128, %s1373_s23  ;;  %v392_v14 = vmul.f32 %v391_v58, %v391_v58  ;;  %v377_v37 = vstv %s1341_s20 }
  0x63   : > { %s1368_s11 = sld [smem:[#allocation3 + %s1363_s10]]  ;;  %v353_v57 = vstv %s1344_s16  ;;  %s916_s24 = sadd.s32 256, %s1373_s23  ;;  %v1005_v59 = vpop.eup %1004  ;;  %v282_v60 = vmul.f32 %v1003_v54, %v281_v46 }
  0x64   : > { %v354_v61 = vmul.f32 %v353_v57, %v352_v44  ;;  %v363_v62 = vstv %s1348_s12  ;;  %s1386_s25 = sadd.s32 %s914_s0, %s1376_s26  ;;  %s1389_s8 = sadd.s32 %s916_s24, %s1376_s26  ;;  %v1007_v0 = vpop.eup %1006  ;;  %v292_v1 = vmul.f32 %v1005_v59, %v291_v51 }
  0x65   : > { %v373_v63 = vstv %s1350_s22  ;;  %v364_v2 = vmul.f32 %v363_v62, %v362_v47  ;;  %s1393_s27 = sld [smem:[#allocation3 + %s1386_s25]]  ;;  %v1009_v6 = vpop.eup %1008  ;;  %v283_v7 = vadd.f32 %v282_v60, %v272_v55  ;;  %v302_v8 = vmul.f32 %v1007_v0, %v301_v52  ;;  %s918_s17 = sadd.s32 384, %s1373_s23 }
  0x66   : > { %v374_v3 = vmul.f32 %v373_v63, %v372_v48  ;;  %s1396_s28 = sld [smem:[#allocation3 + %s1389_s8]]  ;;  %v355_v9 = vmul.f32 1.442695, %v354_v61  ;;  %s920_s9 = sadd.s32 512, %s1373_s23  ;;  %v312_v11 = vmul.f32 %v1009_v6, %v311_v56  ;;  %v387_v38 = vstv %s1352_s29 }
  0x67   : > { %v383_v4 = vstv %s1354_s6  ;;  %v365_v12 = vmul.f32 1.442695, %v364_v2  ;;  %s1401_s16 = sadd.s32 %s918_s17, %s1376_s26  ;;  %s1404_s12 = sadd.s32 %s920_s9, %s1376_s26  ;;  %v293_v15 = vadd.f32 %v292_v1, %v283_v7 }
  0x68   : > { %v384_v10 = vmul.f32 %v383_v4, %v382_v53  ;;  %v375_v13 = vmul.f32 1.442695, %v374_v3  ;;  %1010 = vpow2.f32 %v355_v9  ;;  %v393_v17 = vstv %s1359_s30  ;;  %s1408_s22 = sld [smem:[#allocation3 + %s1401_s16]]  ;;  %s1418_s23 = sadd.s32 3, %s1255_s19 }
  0x69   : > { %s1411_s6 = sld [smem:[#allocation3 + %s1404_s12]]  ;;  %1012 = vpow2.f32 %v365_v12  ;;  %v394_v18 = vmul.f32 %v393_v17, %v392_v14  ;;  %v436_v19 = vstv %s1368_s11  ;;  %v303_v20 = vadd.f32 %v302_v8, %v293_v15 }
  0x6a   : > { %v385_v16 = vmul.f32 1.442695, %v384_v10  ;;  %s1414_s21 = sld [smem:[#allocation5 + %s1324_s5]]  ;;  %1014 = vpow2.f32 %v375_v13  ;;  %v437_v21 = vsub.f32 %v436_v19, %v1264_v5 }
  0x6b   : > { %s1421_s30 = sld [smem:[#allocation5 + %s1363_s10]]  ;;  %v395_v22 = vmul.f32 1.442695, %v394_v18  ;;  %v446_v23 = vstv %s1393_s27  ;;  %v313_v25 = vadd.f32 %v312_v11, %v303_v20 }
  0x6c   : > { %s1424_s26 = sld [smem:[#allocation5 + %s1386_s25]]  ;;  %1016 = vpow2.f32 %v385_v16  ;;  %v456_v24 = vstv %s1396_s28  ;;  %v447_v26 = vsub.f32 %v446_v23, %v1264_v5  ;;  %v438_v28 = vmul.f32 %v437_v21, %v437_v21  ;;  %s1461_s28 = sand.u32 127, %s1418_s23 }
  0x6d   : > { %s1428_s5 = sld [smem:[#allocation5 + %s1389_s8]]  ;;  %v457_v27 = vsub.f32 %v456_v24, %v1264_v5  ;;  %1018 = vpow2.f32 %v395_v22  ;;  %315 = vst.msk [vmem:[#allocation2] sm:$0xff] %vm314_vm0, %v313_v25 }
  0x6e   : > { %s1431_s11 = sld [smem:[#allocation7 + %s1363_s10]]  ;;  %v466_v29 = vstv %s1408_s22  ;;  %v448_v31 = vmul.f32 %v447_v26, %v447_v26 }
  0x6f   : > { %s1436_s0 = sld [smem:[#allocation7 + %s1386_s25]]  ;;  %v476_v30 = vstv %s1411_s6  ;;  %v458_v32 = vmul.f32 %v457_v27, %v457_v27  ;;  %v467_v33 = vsub.f32 %v466_v29, %v1264_v5 }
  0x70   : > { %s1439_s24 = sld [smem:[#allocation7 + %s1389_s8]]  ;;  %s492_s8 = sshra.s32 %s1418_s23, 7  ;;  %v477_v34 = vsub.f32 %v476_v30, %v1264_v5  ;;  %v397_v43 = vstv %s1414_s21 }
  0x71   : > { %s1444_s17 = sld [smem:[#allocation7 + %s1401_s16]]  ;;  %s1458_s27 = sshll.u32 %s492_s8, 7  ;;  %v468_v40 = vmul.f32 %v467_v33, %v467_v33  ;;  %v443_v19 = vstv %s1421_s30 }
  0x72   : > { %s1447_s10 = sld [smem:[#allocation7 + %s1404_s12]]  ;;  %s922_s9 = sadd.s32 128, %s1458_s27  ;;  %v478_v41 = vmul.f32 %v477_v34, %v477_v34  ;;  %v1011_v42 = vpop.eup %1010  ;;  %v453_v22 = vstv %s1424_s26 }
  0x73   : > { %s1453_s25 = sld [smem:[#allocation3 + %s1418_s23]]  ;;  %s924_s22 = sadd.s32 256, %s1458_s27  ;;  %v1013_v47 = vpop.eup %1012  ;;  %v358_v48 = vmul.f32 %v1011_v42, %v357_v35  ;;  %v463_v23 = vstv %s1428_s5 }
  0x74   : > { %v439_v39 = vstv %s1431_s11  ;;  %s1471_s6 = sadd.s32 %s922_s9, %s1461_s28  ;;  %s1474_s8 = sadd.s32 %s924_s22, %s1461_s28  ;;  %v1015_v52 = vpop.eup %1014  ;;  %v368_v53 = vmul.f32 %v1013_v47, %v367_v36  ;;  %v316_v58 = vld [vmem:[#allocation2] sm:$0xff] }
  0x75   : > { %v440_v44 = vmul.f32 %v439_v39, %v438_v28  ;;  %v449_v45 = vstv %s1436_s0  ;;  %s1480_s7 = sld [smem:[#allocation3 + %s1471_s6]]  ;;  %s926_s20 = sadd.s32 384, %s1458_s27  ;;  %v378_v59 = vmul.f32 %v1015_v52, %v377_v37  ;;  %317 = vst.msk [vmem:[%s1329_s15] sm:$0xff] %vm314_vm0, %v316_v58 }
  0x76   : > { %v459_v46 = vstv %s1439_s24  ;;  %s1483_s4 = sld [smem:[#allocation3 + %s1474_s8]]  ;;  %v450_v49 = vmul.f32 %v449_v45, %v448_v31  ;;  %s928_s29 = sadd.s32 512, %s1458_s27  ;;  %v1017_v57 = vpop.eup %1016  ;;  %v369_v63 = vadd.f32 %v368_v53, %v358_v48 }
  0x77   : > { %v460_v50 = vmul.f32 %v459_v46, %v458_v32  ;;  %v469_v51 = vstv %s1444_s17  ;;  %v441_v54 = vmul.f32 1.442695, %v440_v44  ;;  %s1490_s21 = sadd.s32 %s926_s20, %s1461_s28  ;;  %s1493_s11 = sadd.s32 %s928_s29, %s1461_s28  ;;  %v388_v0 = vmul.f32 %v1017_v57, %v387_v38  ;;  %v1019_v2 = vpop.eup %1018 }
  0x78   : > { %v470_v55 = vmul.f32 %v469_v51, %v468_v40  ;;  %v479_v56 = vstv %s1447_s10  ;;  %v451_v60 = vmul.f32 1.442695, %v450_v49  ;;  %s1496_s0 = sld [smem:[#allocation3 + %s1490_s21]]  ;;  %v379_v6 = vadd.f32 %v378_v59, %v369_v63 }
  0x79   : > { %v461_v61 = vmul.f32 1.442695, %v460_v50  ;;  %v480_v62 = vmul.f32 %v479_v56, %v478_v41  ;;  %s1501_s24 = sld [smem:[#allocation5 + %s1401_s16]]  ;;  %1020 = vpow2.f32 %v441_v54  ;;  %v522_v4 = vstv %s1453_s25 }
  0x7a   : > { %v471_v1 = vmul.f32 1.442695, %v470_v55  ;;  %s1504_s17 = sld [smem:[#allocation3 + %s1493_s11]]  ;;  %1022 = vpow2.f32 %v451_v60  ;;  %v398_v7 = vmul.f32 %v1019_v2, %v397_v43  ;;  %v523_v8 = vsub.f32 %v522_v4, %v1264_v5 }
  0x7b   : > { %s1507_s10 = sld [smem:[#allocation5 + %s1404_s12]]  ;;  %v481_v3 = vmul.f32 1.442695, %v480_v62  ;;  %1024 = vpow2.f32 %v461_v61  ;;  %v532_v9 = vstv %s1480_s7  ;;  %v389_v11 = vadd.f32 %v388_v0, %v379_v6 }
  0x7c   : > { %s1510_s27 = sld [smem:[#allocation5 + %s1418_s23]]  ;;  %1026 = vpow2.f32 %v471_v1  ;;  %v542_v10 = vstv %s1483_s4  ;;  %v533_v12 = vsub.f32 %v532_v9, %v1264_v5  ;;  %v524_v16 = vmul.f32 %v523_v8, %v523_v8 }
  0x7d   : > { %s1514_s16 = sld [smem:[#allocation5 + %s1471_s6]]  ;;  %1028 = vpow2.f32 %v481_v3  ;;  %v543_v13 = vsub.f32 %v542_v10, %v1264_v5  ;;  %v399_v15 = vadd.f32 %v398_v7, %v389_v11 }
  0x7e   : > { %s1517_s28 = sld [smem:[#allocation5 + %s1474_s8]]  ;;  %v552_v14 = vstv %s1496_s0  ;;  %v534_v17 = vmul.f32 %v533_v12, %v533_v12 }
  0x7f   : > { %s1521_s12 = sld [smem:[#allocation7 + %s1418_s23]]  ;;  %s1541_s23 = sadd.s32 4, %s1255_s19  ;;  %v553_v18 = vsub.f32 %v552_v14, %v1264_v5  ;;  %v544_v20 = vmul.f32 %v543_v13, %v543_v13  ;;  %400 = vst.msk [vmem:[#allocation2] sm:$0xff] %vm314_vm0, %v399_v15  ;;  %v473_v26 = vstv %s1501_s24 }
  0x80   : > { %s1524_s9 = sld [smem:[#allocation7 + %s1471_s6]]  ;;  %v562_v21 = vstv %s1504_s17  ;;  %s1553_s4 = sand.u32 127, %s1541_s23 }
  0x81   : > { %s1529_s25 = sld [smem:[#allocation7 + %s1474_s8]]  ;;  %s578_s8 = sshra.s32 %s1541_s23, 7  ;;  %v554_v24 = vmul.f32 %v553_v18, %v553_v18  ;;  %v563_v25 = vsub.f32 %v562_v21, %v1264_v5  ;;  %v483_v27 = vstv %s1507_s10 }
  0x82   : > { %s1532_s22 = sld [smem:[#allocation7 + %s1490_s21]]  ;;  %s1550_s7 = sshll.u32 %s578_s8, 7  ;;  %v529_v8 = vstv %s1510_s27 }
  0x83   : > { %s1536_s20 = sld [smem:[#allocation7 + %s1493_s11]]  ;;  %s930_s30 = sadd.s32 128, %s1550_s7  ;;  %v1021_v30 = vpop.eup %1020  ;;  %v564_v39 = vmul.f32 %v563_v25, %v563_v25  ;;  %v539_v9 = vstv %s1514_s16 }
  0x84   : > { %s1545_s6 = sld [smem:[#allocation3 + %s1541_s23]]  ;;  %s932_s29 = sadd.s32 256, %s1550_s7  ;;  %v1023_v35 = vpop.eup %1022  ;;  %v444_v36 = vmul.f32 %v1021_v30, %v443_v19  ;;  %v549_v10 = vstv %s1517_s28 }
  0x85   : > { %v525_v28 = vstv %s1521_s12  ;;  %s1566_s0 = sadd.s32 %s930_s30, %s1553_s4  ;;  %s1569_s17 = sadd.s32 %s932_s29, %s1553_s4  ;;  %v1025_v40 = vpop.eup %1024  ;;  %v454_v41 = vmul.f32 %v1023_v35, %v453_v22 }
  0x86   : > { %v535_v29 = vstv %s1524_s9  ;;  %v526_v31 = vmul.f32 %v525_v28, %v524_v16  ;;  %s1574_s26 = sld [smem:[#allocation3 + %s1566_s0]]  ;;  %s934_s24 = sadd.s32 384, %s1550_s7  ;;  %v1027_v45 = vpop.eup %1026  ;;  %v464_v46 = vmul.f32 %v1025_v40, %v463_v23  ;;  %v401_v54 = vld [vmem:[#allocation2] sm:$0xff] }
  0x87   : > { %v536_v32 = vmul.f32 %v535_v29, %v534_v17  ;;  %v545_v33 = vstv %s1529_s25  ;;  %s1577_s5 = sld [smem:[#allocation3 + %s1569_s17]]  ;;  %s936_s10 = sadd.s32 512, %s1550_s7  ;;  %v1029_v50 = vpop.eup %1028  ;;  %v455_v51 = vadd.f32 %v454_v41, %v444_v36  ;;  %v474_v52 = vmul.f32 %v1027_v45, %v473_v26  ;;  %874 = vst.msk [vmem:[%s1329_s15 + $0x8] sm:$0xff] %vm314_vm0, %v401_v54 }
  0x88   : > { %v555_v34 = vstv %s1532_s22  ;;  %v546_v37 = vmul.f32 %v545_v33, %v544_v20  ;;  %v527_v42 = vmul.f32 1.442695, %v526_v31  ;;  %s1583_s12 = sadd.s32 %s934_s24, %s1553_s4  ;;  %s1586_s9 = sadd.s32 %s936_s10, %s1553_s4  ;;  %v484_v55 = vmul.f32 %v1029_v50, %v483_v27 }
  0x89   : > { %v556_v38 = vmul.f32 %v555_v34, %v554_v24  ;;  %v537_v43 = vmul.f32 1.442695, %v536_v32  ;;  %v565_v44 = vstv %s1536_s20  ;;  %s1589_s25 = sld [smem:[#allocation3 + %s1583_s12]]  ;;  %v465_v58 = vadd.f32 %v464_v46, %v455_v51 }
  0x8a   : > { %v547_v47 = vmul.f32 1.442695, %v546_v37  ;;  %v566_v49 = vmul.f32 %v565_v44, %v564_v39  ;;  %s1592_s22 = sld [smem:[#allocation3 + %s1586_s9]]  ;;  %1030 = vpow2.f32 %v527_v42  ;;  %v608_v53 = vstv %s1545_s6 }
  0x8b   : > { %v557_v48 = vmul.f32 1.442695, %v556_v38  ;;  %s1595_s20 = sld [smem:[#allocation5 + %s1490_s21]]  ;;  %1032 = vpow2.f32 %v537_v43  ;;  %v609_v57 = vsub.f32 %v608_v53, %v1264_v5  ;;  %v475_v63 = vadd.f32 %v474_v52, %v465_v58 }
  0x8c   : > { %s1598_s8 = sld [smem:[#allocation5 + %s1493_s11]]  ;;  %v567_v56 = vmul.f32 1.442695, %v566_v49  ;;  %1034 = vpow2.f32 %v547_v47  ;;  %v618_v59 = vstv %s1574_s26 }
  0x8d   : > { %s1602_s7 = sld [smem:[#allocation5 + %s1541_s23]]  ;;  %v628_v60 = vstv %s1577_s5  ;;  %1036 = vpow2.f32 %v557_v48  ;;  %v619_v61 = vsub.f32 %v618_v59, %v1264_v5  ;;  %v610_v0 = vmul.f32 %v609_v57, %v609_v57 }
  0x8e   : > { %s1608_s21 = sld [smem:[#allocation5 + %s1566_s0]]  ;;  %v629_v62 = vsub.f32 %v628_v60, %v1264_v5  ;;  %1038 = vpow2.f32 %v567_v56  ;;  %v485_v3 = vadd.f32 %v484_v55, %v475_v63 }
  0x8f   : > { %s1611_s11 = sld [smem:[#allocation7 + %s1541_s23]]  ;;  %v638_v1 = vstv %s1589_s25  ;;  %v620_v4 = vmul.f32 %v619_v61, %v619_v61 }
  0x90   : > { %s1616_s6 = sld [smem:[#allocation7 + %s1566_s0]]  ;;  %v648_v2 = vstv %s1592_s22  ;;  %s1635_s0 = sadd.s32 5, %s1255_s19  ;;  %v630_v6 = vmul.f32 %v629_v62, %v629_v62  ;;  %v639_v7 = vsub.f32 %v638_v1, %v1264_v5  ;;  %486 = vst.msk [vmem:[#allocation2] sm:$0xff] %vm314_vm0, %v485_v3 }
  0x91   : > { %s1619_s4 = sld [smem:[#allocation7 + %s1569_s17]]  ;;  %v649_v11 = vsub.f32 %v648_v2, %v1264_v5  ;;  %s1649_s5 = sand.u32 127, %s1635_s0  ;;  %v559_v12 = vstv %s1595_s20 }
  0x92   : > { %s1624_s30 = sld [smem:[#allocation7 + %s1583_s12]]  ;;  %v569_v13 = vstv %s1598_s8  ;;  %v640_v15 = vmul.f32 %v639_v7, %v639_v7 }
  0x93   : > { %s1627_s23 = sld [smem:[#allocation7 + %s1586_s9]]  ;;  %v650_v19 = vmul.f32 %v649_v11, %v649_v11  ;;  %v615_v57 = vstv %s1602_s7 }
  0x94   : > { %s1630_s29 = sld [smem:[#allocation5 + %s1569_s17]]  ;;  %s664_s17 = sshra.s32 %s1635_s0, 7  ;;  %v1031_v20 = vpop.eup %1030  ;;  %v625_v58 = vstv %s1608_s21 }
  0x95   : > { %s1639_s26 = sld [smem:[#allocation3 + %s1635_s0]]  ;;  %s1646_s19 = sshll.u32 %s664_s17, 7  ;;  %v611_v14 = vstv %s1611_s11  ;;  %v1033_v25 = vpop.eup %1032  ;;  %v530_v26 = vmul.f32 %v1031_v20, %v529_v8 }
  0x96   : > { %s938_s27 = sadd.s32 128, %s1646_s19  ;;  %s940_s16 = sadd.s32 256, %s1646_s19  ;;  %v612_v16 = vmul.f32 %v611_v14, %v610_v0  ;;  %v621_v17 = vstv %s1616_s6  ;;  %v1035_v30 = vpop.eup %1034  ;;  %v540_v31 = vmul.f32 %v1033_v25, %v539_v9 }
  0x97   : > { %v631_v18 = vstv %s1619_s4  ;;  %s1660_s28 = sadd.s32 %s938_s27, %s1649_s5  ;;  %s1663_s24 = sadd.s32 %s940_s16, %s1649_s5  ;;  %v622_v21 = vmul.f32 %v621_v17, %v620_v4  ;;  %v1037_v35 = vpop.eup %1036  ;;  %v550_v36 = vmul.f32 %v1035_v30, %v549_v10  ;;  %v487_v42 = vld [vmem:[#allocation2] sm:$0xff] }
  0x98   : > { %v632_v22 = vmul.f32 %v631_v18, %v630_v6  ;;  %v641_v23 = vstv %s1624_s30  ;;  %s1668_s10 = sld [smem:[#allocation3 + %s1660_s28]]  ;;  %v613_v27 = vmul.f32 1.442695, %v612_v16  ;;  %s942_s22 = sadd.s32 384, %s1646_s19  ;;  %v1039_v39 = vpop.eup %1038  ;;  %v541_v40 = vadd.f32 %v540_v31, %v530_v26  ;;  %879 = vst.msk [vmem:[%s1329_s15 + $0x10] sm:$0xff] %vm314_vm0, %v487_v42 }
  0x99   : > { %v651_v24 = vstv %s1627_s23  ;;  %s1671_s25 = sld [smem:[#allocation3 + %s1663_s24]]  ;;  %v642_v28 = vmul.f32 %v641_v23, %v640_v15  ;;  %s944_s20 = sadd.s32 512, %s1646_s19  ;;  %v623_v32 = vmul.f32 1.442695, %v622_v21  ;;  %v560_v41 = vmul.f32 %v1037_v35, %v559_v12 }
  0x9a   : > { %v652_v29 = vmul.f32 %v651_v24, %v650_v19  ;;  %v633_v33 = vmul.f32 1.442695, %v632_v22  ;;  %s1676_s8 = sadd.s32 %s942_s22, %s1649_s5  ;;  %s1679_s11 = sadd.s32 %s944_s20, %s1649_s5  ;;  %1040 = vpow2.f32 %v613_v27  ;;  %v551_v44 = vadd.f32 %v550_v36, %v541_v40 }
  0x9b   : > { %v694_v34 = vstv %s1639_s26  ;;  %v643_v37 = vmul.f32 1.442695, %v642_v28  ;;  %s1683_s6 = sld [smem:[#allocation3 + %s1676_s8]]  ;;  %1042 = vpow2.f32 %v623_v32  ;;  %v570_v45 = vmul.f32 %v1039_v39, %v569_v13 }
  0x9c   : > { %v653_v38 = vmul.f32 1.442695, %v652_v29  ;;  %s1686_s4 = sld [smem:[#allocation3 + %s1679_s11]]  ;;  %1044 = vpow2.f32 %v633_v33  ;;  %v695_v43 = vsub.f32 %v694_v34, %v1264_v5  ;;  %v561_v49 = vadd.f32 %v560_v41, %v551_v44 }
  0x9d   : > { %s1689_s30 = sld [smem:[#allocation5 + %s1583_s12]]  ;;  %1046 = vpow2.f32 %v643_v37  ;;  %v635_v61 = vstv %s1630_s29 }
  0x9e   : > { %s1692_s23 = sld [smem:[#allocation5 + %s1586_s9]]  ;;  %v704_v46 = vstv %s1668_s10  ;;  %1048 = vpow2.f32 %v653_v38  ;;  %v696_v51 = vmul.f32 %v695_v43, %v695_v43  ;;  %v571_v54 = vadd.f32 %v570_v45, %v561_v49 }
  0x9f   : > { %s689_s26 = sld [smem:[#allocation7 + %s1635_s0]]  ;;  %v705_v47 = vsub.f32 %v704_v46, %v1264_v5  ;;  %v714_v48 = vstv %s1671_s25 }
  0xa0   : > { %s690_s12 = sld [smem:[#allocation7 + %s1660_s28]]  ;;  %v715_v50 = vsub.f32 %v714_v48, %v1264_v5  ;;  %572 = vst.msk [vmem:[#allocation2] sm:$0xff] %vm314_vm0, %v571_v54 }
  0xa1   : > { %s691_s9 = sld [smem:[#allocation7 + %s1663_s24]]  ;;  %v724_v52 = vstv %s1683_s6  ;;  %v706_v55 = vmul.f32 %v705_v47, %v705_v47 }
  0xa2   : > { %s1704_s17 = sld [smem:[#allocation7 + %s1676_s8]]  ;;  %v734_v53 = vstv %s1686_s4  ;;  %v716_v56 = vmul.f32 %v715_v50, %v715_v50  ;;  %v725_v59 = vsub.f32 %v724_v52, %v1264_v5 }
  0xa3   : > { %s1707_s19 = sld [smem:[#allocation7 + %s1679_s11]]  ;;  %v735_v60 = vsub.f32 %v734_v53, %v1264_v5  ;;  %v645_v62 = vstv %s1689_s30 }
  0xa4   : > { %v655_v63 = vstv %s1692_s23  ;;  %v1041_v1 = vpop.eup %1040  ;;  %v726_v6 = vmul.f32 %v725_v59, %v725_v59  ;;  %s684_s7 = sld [smem:[#allocation5 + %s1635_s0]] }
  0xa5   : > { %v697_v0 = vstv %s689_s26  ;;  %v1043_v7 = vpop.eup %1042  ;;  %v616_v8 = vmul.f32 %v1041_v1, %v615_v57  ;;  %v736_v15 = vmul.f32 %v735_v60, %v735_v60  ;;  %s685_s21 = sld [smem:[#allocation5 + %s1660_s28]] }
  0xa6   : > { %v698_v2 = vmul.f32 %v697_v0, %v696_v51  ;;  %v707_v3 = vstv %s690_s12  ;;  %v1045_v12 = vpop.eup %1044  ;;  %v626_v5 = vmul.f32 %v1043_v7, %v625_v58  ;;  %s686_s29 = sld [smem:[#allocation5 + %s1663_s24]] }
  0xa7   : > { %v717_v4 = vstv %s691_s9  ;;  %v708_v9 = vmul.f32 %v707_v3, %v706_v55  ;;  %v1047_v16 = vpop.eup %1046  ;;  %v636_v17 = vmul.f32 %v1045_v12, %v635_v61  ;;  %v573_v26 = vld [vmem:[#allocation2] sm:$0xff]  ;;  %s687_s5 = sld [smem:[#allocation5 + %s1676_s8]] }
  0xa8   : > { %v718_v10 = vmul.f32 %v717_v4, %v716_v56  ;;  %v727_v11 = vstv %s1704_s17  ;;  %v699_v13 = vmul.f32 1.442695, %v698_v2  ;;  %v1049_v21 = vpop.eup %1048  ;;  %v627_v22 = vadd.f32 %v626_v5, %v616_v8  ;;  %884 = vst.msk [vmem:[%s1329_s15 + $0x18] sm:$0xff] %vm314_vm0, %v573_v26  ;;  %s688_s27 = sld [smem:[#allocation5 + %s1679_s11]] }
  0xa9   : > { %v728_v14 = vmul.f32 %v727_v11, %v726_v6  ;;  %v709_v18 = vmul.f32 1.442695, %v708_v9  ;;  %v737_v20 = vstv %s1707_s19  ;;  %v646_v23 = vmul.f32 %v1047_v16, %v645_v62 }
  0xaa   : > { %v719_v19 = vmul.f32 1.442695, %v718_v10  ;;  %1050 = vpow2.f32 %v699_v13  ;;  %v738_v25 = vmul.f32 %v737_v20, %v736_v15  ;;  %v637_v27 = vadd.f32 %v636_v17, %v627_v22 }
  0xab   : > { %v729_v24 = vmul.f32 1.442695, %v728_v14  ;;  %1052 = vpow2.f32 %v709_v18  ;;  %v656_v28 = vmul.f32 %v1049_v21, %v655_v63  ;;  %v701_v32 = vstv %s684_s7 }
  0xac   : > { %1054 = vpow2.f32 %v719_v19  ;;  %v739_v29 = vmul.f32 1.442695, %v738_v25  ;;  %v647_v30 = vadd.f32 %v646_v23, %v637_v27  ;;  %v711_v33 = vstv %s685_s21 }
  0xad   : > { %1056 = vpow2.f32 %v729_v24  ;;  %v721_v35 = vstv %s686_s29  ;;  %v731_v38 = vstv %s687_s5 }
  0xae   : > { %1058 = vpow2.f32 %v739_v29  ;;  %v657_v31 = vadd.f32 %v656_v28, %v647_v30  ;;  %v741_v43 = vstv %s688_s27 }
  0xb0   : > { %658 = vst.msk [vmem:[#allocation2] sm:$0xff] %vm314_vm0, %v657_v31 }
  0xb4   : > { %v1051_v34 = vpop.eup %1050 }
  0xb5   : > { %v1053_v36 = vpop.eup %1052  ;;  %v702_v37 = vmul.f32 %v1051_v34, %v701_v32 }
  0xb6   : > { %v1055_v39 = vpop.eup %1054  ;;  %v712_v40 = vmul.f32 %v1053_v36, %v711_v33 }
  0xb7   : > { %v1057_v41 = vpop.eup %1056  ;;  %v722_v42 = vmul.f32 %v1055_v39, %v721_v35  ;;  %v659_v47 = vld [vmem:[#allocation2] sm:$0xff] }
  0xb8   : > { %v713_v44 = vadd.f32 %v712_v40, %v702_v37  ;;  %v732_v45 = vmul.f32 %v1057_v41, %v731_v38  ;;  %v1059_v46 = vpop.eup %1058  ;;  %889 = vst.msk [vmem:[%s1329_s15 + $0x20] sm:$0xff] %vm314_vm0, %v659_v47 }
  0xb9   : > { %v742_v49 = vmul.f32 %v1059_v46, %v741_v43 }
  0xba   : > { %v723_v48 = vadd.f32 %v722_v42, %v713_v44 }
  0xbc   : > { %v733_v50 = vadd.f32 %v732_v45, %v723_v48 }
  0xbe   : > { %v743_v51 = vadd.f32 %v742_v49, %v733_v50 }
  0xc0   : > { %744 = vst.msk [vmem:[#allocation2] sm:$0xff] %vm314_vm0, %v743_v51 }
  0xc7   : > { %v745_v52 = vld [vmem:[#allocation2] sm:$0xff] }
  0xc8   : > { %894 = vst.msk [vmem:[%s1329_s15 + $0x28] sm:$0xff] %vm314_vm0, %v745_v52 }
  0xc9 PF: > { %s15_s14 = sadd.s32 1, %s1129_s14   ;;  %s1753_s12 = smov %s1125_s13 }
  0xca   : > { %p12_p3 = scmp.ge.s32.totalorder %s15_s14, 4   ;;  %s1754_s13 = smov %s1756_s18 }
  0xcc   :  { %14 = sbr.rel (!%p12_p3) target bundleno = 5 (0x5), region = 77 }
  0xd3   :  { %782 = vsyncpa [#allocation4], 1 }
  0xd4   :  { %784 = vsyncpa [#allocation4 + $0x1], 1 }
  0xd5   :  { %785 = vsyncpa [#allocation6], 1 }

</bundles_post_ra>
